<compile_context>
chip_gen: v7x
topology: tpu7x:2x2x1
jax: 0.10.0
libtpu: 0.0.40
codegen_flags: <defaults>
</compile_context>

<pallas_src>
import dataclasses
import functools

import jax
import jax.numpy as jnp
from jax.experimental import pallas as pl
from jax.experimental.pallas import tpu as pltpu

C = 32           # embed_dim == transformer_dim (prompt_dim / mask_embed_dim)
NQ = 4           # num_mask_tokens (number of mask queries)
MAX_TOKENS = 64  # max number of image patches supported by the learned pos-embed
HEAD_PAD = 128   # lane-dense width of the fused box/disc head output

VMEM_SPEC = pl.BlockSpec(memory_space=pltpu.MemorySpace.VMEM)


def _vspecs(n):
    return [pl.BlockSpec(memory_space=pltpu.MemorySpace.VMEM) for _ in range(n)]


# ------------------------- in-kernel math helpers --------------------------- #

def _dot(a, b):
    # MXU matmul: bf16 operands, f32 accumulation.
    return jnp.dot(a.astype(jnp.bfloat16), b.astype(jnp.bfloat16),
                   preferred_element_type=jnp.float32)


def _dot_t(a, b):
    # a @ b.T without materializing a transpose: contract the last axis of both.
    return jax.lax.dot_general(
        a.astype(jnp.bfloat16), b.astype(jnp.bfloat16),
        (((1,), (1,)), ((), ())), preferred_element_type=jnp.float32)


def _softmax_matmul(q, k, v):
    """softmax(q @ k^T) @ v with deferred normalization (EUP reciprocal on the result)."""
    s = _dot_t(q, k)                              # (Tq, Tk) f32
    m = jnp.max(s, axis=-1, keepdims=True)
    p = jnp.exp(s - m)
    l = jnp.sum(p, axis=-1, keepdims=True)
    return _dot(p, v) * pl.reciprocal(l, approx=True)


# ----------------------------- Pallas kernels ------------------------------- #

def _encoder_kernel(xp_ref, pos_ref, pe_w_ref, pe_b_ref,
                    q_w_ref, q_b_ref, k_w_ref, k_b_ref, v_w_ref, v_b_ref,
                    o_w_ref, o_b_ref, m1_w_ref, m1_b_ref, m2_w_ref, m2_b_ref,
                    o_ref, *, scale):
    # patch embedding + positional embedding
    x = _dot(xp_ref[...], pe_w_ref[...]) + pe_b_ref[...] + pos_ref[...]
    # self-attention block (scale folded into q, softmax normalization deferred)
    q = (_dot(x, q_w_ref[...]) + q_b_ref[...]) * scale
    k = _dot(x, k_w_ref[...]) + k_b_ref[...]
    v = _dot(x, v_w_ref[...]) + v_b_ref[...]
    a = _softmax_matmul(q, k, v)
    x = x + _dot(a, o_w_ref[...]) + o_b_ref[...]
    # MLP block
    h = jnp.maximum(_dot(x, m1_w_ref[...]) + m1_b_ref[...], 0.0)
    x = x + _dot(h, m2_w_ref[...]) + m2_b_ref[...]
    o_ref[...] = x


def _decoder_kernel(tok_ref, src_ref, pe_ref, nme_ref,
                    q_w_ref, q_b_ref, k_w_ref, k_b_ref, v_w_ref, v_b_ref,
                    o_w_ref, o_b_ref, m1_w_ref, m1_b_ref, m2_w_ref, m2_b_ref,
                    up_w_ref, up_b_ref,
                    hs_ref, proj_ref, *, scale):
    src = src_ref[...] + nme_ref[...]             # image embeddings + dense (no-mask) embed
    tq = tok_ref[...]
    # token -> image cross attention
    q = (_dot(tq, q_w_ref[...]) + q_b_ref[...]) * scale
    k = _dot(src + pe_ref[...], k_w_ref[...]) + k_b_ref[...]
    v = _dot(src, v_w_ref[...]) + v_b_ref[...]
    a = _softmax_matmul(q, k, v)
    tq = tq + _dot(a, o_w_ref[...]) + o_b_ref[...]
    # MLP block
    h = jnp.maximum(_dot(tq, m1_w_ref[...]) + m1_b_ref[...], 0.0)
    tq = tq + _dot(h, m2_w_ref[...]) + m2_b_ref[...]
    hs_ref[...] = tq
    # per-voxel up projection at LOW resolution (repeat happens after, in glue)
    proj_ref[...] = _dot(src, up_w_ref[...]) + up_b_ref[...]


def _heads_kernel(me_ref, proj_ref,
                  hy1_w_ref, hy1_b_ref, hy2_w_ref, hy2_b_ref,
                  bx1_w_ref, bx1_b_ref, bx2_w_ref, bx2_b_ref, bx3_w_ref,
                  ds1_w_ref, ds1_b_ref, ds2_w_ref, hb_b_ref,
                  masks_ref, heads_ref):
    me = me_ref[...]                              # (nt*NQ, C) mask-token embeddings
    # hyper-network MLP + mask logits (transposed contraction, no transpose materialized)
    hh = jnp.maximum(_dot(me, hy1_w_ref[...]) + hy1_b_ref[...], 0.0)
    hyper = _dot(hh, hy2_w_ref[...]) + hy2_b_ref[...]
    masks_ref[...] = _dot_t(hyper, proj_ref[...])                 # (nt*NQ, L)
    # box head hidden layers
    hb = jnp.maximum(_dot(me, bx1_w_ref[...]) + bx1_b_ref[...], 0.0)
    hb = jnp.maximum(_dot(hb, bx2_w_ref[...]) + bx2_b_ref[...], 0.0)
    # disc head hidden layer
    hd = jnp.maximum(_dot(me, ds1_w_ref[...]) + ds1_b_ref[...], 0.0)
    # lane-dense combined output: cols 0..5 = sigmoid(box logits), col 6 = disc logit
    out = _dot(hb, bx3_w_ref[...]) + _dot(hd, ds2_w_ref[...]) + hb_b_ref[...]
    lane = jax.lax.broadcasted_iota(jnp.int32, out.shape, 1)
    heads_ref[...] = jnp.where(lane < 6, jax.nn.sigmoid(out), out)


# ------------------------------- Parameters --------------------------------- #

def _w(key, shape, scale=0.02):
    return scale * jax.random.normal(key, shape, jnp.float32)


def init_params(key, *, cin=1, patch=(4, 4, 4)):
    keys = iter(jax.random.split(key, 64))
    nxt = lambda: next(keys)
    pv = cin * patch[0] * patch[1] * patch[2]
    p = {}
    # --- image encoder (ViT-like: patch embed + 1 transformer block) ---
    p["pe_w"] = _w(nxt(), (pv, C)); p["pe_b"] = jnp.zeros((C,), jnp.float32)
    p["pos_embed"] = _w(nxt(), (MAX_TOKENS, C))
    for n in ("enc_q", "enc_k", "enc_v", "enc_o"):
        p[n + "_w"] = _w(nxt(), (C, C)); p[n + "_b"] = jnp.zeros((C,), jnp.float32)
    p["enc_mlp_w1"] = _w(nxt(), (C, 4 * C)); p["enc_mlp_b1"] = jnp.zeros((4 * C,), jnp.float32)
    p["enc_mlp_w2"] = _w(nxt(), (4 * C, C)); p["enc_mlp_b2"] = jnp.zeros((C,), jnp.float32)
    # --- prompt encoder ---
    p["no_mask_embed"] = _w(nxt(), (C,))
    # --- mask decoder ---
    p["iou_token"] = _w(nxt(), (1, C))
    p["mask_tokens"] = _w(nxt(), (NQ, C))
    for n in ("dec_q", "dec_k", "dec_v", "dec_o"):
        p[n + "_w"] = _w(nxt(), (C, C)); p[n + "_b"] = jnp.zeros((C,), jnp.float32)
    p["dec_mlp_w1"] = _w(nxt(), (C, 4 * C)); p["dec_mlp_b1"] = jnp.zeros((4 * C,), jnp.float32)
    p["dec_mlp_w2"] = _w(nxt(), (4 * C, C)); p["dec_mlp_b2"] = jnp.zeros((C,), jnp.float32)
    p["up_w"] = _w(nxt(), (C, C)); p["up_b"] = jnp.zeros((C,), jnp.float32)
    p["hyper_w1"] = _w(nxt(), (C, C)); p["hyper_b1"] = jnp.zeros((C,), jnp.float32)
    p["hyper_w2"] = _w(nxt(), (C, C)); p["hyper_b2"] = jnp.zeros((C,), jnp.float32)
    # --- InstanceSam heads ---
    p["box_w1"] = _w(nxt(), (C, C)); p["box_b1"] = jnp.zeros((C,), jnp.float32)
    p["box_w2"] = _w(nxt(), (C, C)); p["box_b2"] = jnp.zeros((C,), jnp.float32)
    p["box_w3"] = _w(nxt(), (C, 6)); p["box_b3"] = jnp.zeros((6,), jnp.float32)
    p["disc_w1"] = _w(nxt(), (C, C)); p["disc_b1"] = jnp.zeros((C,), jnp.float32)
    p["disc_w2"] = _w(nxt(), (C, 1)); p["disc_b2"] = jnp.zeros((1,), jnp.float32)
    return p


# ------------------------------ Model pieces -------------------------------- #

def dense_pe(shape3):
    """Deterministic sin/cos positional encoding, channels-last (L, C)."""
    d, h, w = shape3
    zz, yy, xx = jnp.meshgrid(jnp.arange(d), jnp.arange(h), jnp.arange(w), indexing="ij")
    coords = jnp.stack([zz, yy, xx], axis=-1).astype(jnp.float32).reshape(-1, 3)
    coords = coords / jnp.array([d, h, w], jnp.float32)
    nf = -(-C // 6)
    freqs = (2.0 ** jnp.arange(nf, dtype=jnp.float32))[None, None, :]
    ang = coords[:, :, None] * freqs * jnp.pi
    pe = jnp.concatenate([jnp.sin(ang), jnp.cos(ang)], axis=-1).reshape(coords.shape[0], -1)
    return pe[:, :C]


def image_encoder(params, image, patch_size):
    """image: (Cin, D, H, W).  Returns channels-last embeddings (L, C) and (d, h, w)."""
    cin, D, H, W = image.shape
    pz, py, px = patch_size
    d, h, w = D // pz, H // py, W // px
    L = d * h * w
    # patchify (glue) -> (L, Cin*pz*py*px)
    x = image.reshape(cin, d, pz, h, py, w, px)
    x = jnp.transpose(x, (1, 3, 5, 0, 2, 4, 6)).reshape(L, cin * pz * py * px)
    # TODO(synk): full ViT depth / windowed attention of ImageEncoderViT not replicated;
    # a single fused self-attention + MLP block stands in for it.
    scale = 1.0 / float(C) ** 0.5
    x_enc = pl.pallas_call(
        functools.partial(_encoder_kernel, scale=scale),
        out_shape=jax.ShapeDtypeStruct((L, C), jnp.float32),
        in_specs=_vspecs(16),
        out_specs=VMEM_SPEC,
    )(x, params["pos_embed"][:L],
      params["pe_w"], params["pe_b"].reshape(1, -1),
      params["enc_q_w"], params["enc_q_b"].reshape(1, -1),
      params["enc_k_w"], params["enc_k_b"].reshape(1, -1),
      params["enc_v_w"], params["enc_v_b"].reshape(1, -1),
      params["enc_o_w"], params["enc_o_b"].reshape(1, -1),
      params["enc_mlp_w1"], params["enc_mlp_b1"].reshape(1, -1),
      params["enc_mlp_w2"], params["enc_mlp_b2"].reshape(1, -1))
    return x_enc, (d, h, w)


def mask_decoder(params, x_enc, shape3, text_embedding):
    """Returns (masks_embeds (nt, NQ, C), proj (L, C))."""
    nt = text_embedding.shape[0]
    d, h, w = shape3
    L = d * h * w
    pe_cl = dense_pe(shape3)
    # token assembly (glue): [iou, mask tokens, sparse(=text), text]
    out_tok = jnp.concatenate([params["iou_token"], params["mask_tokens"]], axis=0)  # (1+NQ, C)
    tokens = jnp.concatenate(
        [jnp.broadcast_to(out_tok[None], (nt, 1 + NQ, C)),
         text_embedding[:, None, :],
         text_embedding[:, None, :]], axis=1)                                        # (nt, T, C)
    T = tokens.shape[1]
    tq = tokens.reshape(nt * T, C)
    # TODO(synk): image->token attention branch of the TwoWayTransformer omitted.
    scale = 1.0 / float(C) ** 0.5
    hs, proj = pl.pallas_call(
        functools.partial(_decoder_kernel, scale=scale),
        out_shape=(jax.ShapeDtypeStruct((nt * T, C), jnp.float32),
                   jax.ShapeDtypeStruct((L, C), jnp.float32)),
        in_specs=_vspecs(18),
        out_specs=(VMEM_SPEC, VMEM_SPEC),
    )(tq, x_enc, pe_cl, params["no_mask_embed"].reshape(1, -1),
      params["dec_q_w"], params["dec_q_b"].reshape(1, -1),
      params["dec_k_w"], params["dec_k_b"].reshape(1, -1),
      params["dec_v_w"], params["dec_v_b"].reshape(1, -1),
      params["dec_o_w"], params["dec_o_b"].reshape(1, -1),
      params["dec_mlp_w1"], params["dec_mlp_b1"].reshape(1, -1),
      params["dec_mlp_w2"], params["dec_mlp_b2"].reshape(1, -1),
      params["up_w"], params["up_b"].reshape(1, -1))
    masks_embeds = hs.reshape(nt, T, C)[:, 1:1 + NQ, :]                              # (nt, NQ, C)
    return masks_embeds, proj


def heads_and_masks(params, masks_embeds, proj, shape3):
    """Fused hypernet + mask matmul + box head + disc head (one lane-dense output)."""
    nt = masks_embeds.shape[0]
    d, h, w = shape3
    L = d * h * w
    me = masks_embeds.reshape(nt * NQ, C)
    # lane-padded final head weights: cols 0..5 box, col 6 disc
    bx3_pad = jnp.pad(params["box_w3"], ((0, 0), (0, HEAD_PAD - 6)))
    ds2_pad = jnp.pad(params["disc_w2"], ((0, 0), (6, HEAD_PAD - 7)))
    b_pad = (jnp.pad(params["box_b3"], (0, HEAD_PAD - 6))
             + jnp.pad(params["disc_b2"], (6, HEAD_PAD - 7))).reshape(1, HEAD_PAD)
    masks_small, heads = pl.pallas_call(
        _heads_kernel,
        out_shape=(jax.ShapeDtypeStruct((nt * NQ, L), jnp.float32),
                   jax.ShapeDtypeStruct((nt * NQ, HEAD_PAD), jnp.float32)),
        in_specs=_vspecs(15),
        out_specs=(VMEM_SPEC, VMEM_SPEC),
    )(me, proj,
      params["hyper_w1"], params["hyper_b1"].reshape(1, -1),
      params["hyper_w2"], params["hyper_b2"].reshape(1, -1),
      params["box_w1"], params["box_b1"].reshape(1, -1),
      params["box_w2"], params["box_b2"].reshape(1, -1),
      bx3_pad,
      params["disc_w1"], params["disc_b1"].reshape(1, -1),
      ds2_pad, b_pad)
    boxes = heads[:, :6].reshape(nt, NQ, 6)
    disc = heads[:, 6].reshape(nt, NQ)[:, 1:]
    # project-then-repeat: 2x nearest-neighbour upsample commutes with the per-voxel
    # linear, so it is applied to the small mask result instead of the volume.
    # TODO(synk): ConvTranspose3d upscaling of the original decoder replaced by this
    # nearest-neighbour 2x upsample + linear channel projection.
    m = masks_small.reshape(nt, NQ, d, h, w)
    low = jnp.repeat(jnp.repeat(jnp.repeat(m, 2, axis=2), 2, axis=3), 2, axis=4)
    return low, boxes, disc


@functools.partial(jax.jit, static_argnames=("patch_size",))
def _forward_one(params, image, text_embedding, *, patch_size):
    x_enc, shape3 = image_encoder(params, image, patch_size)
    masks_embeds, proj = mask_decoder(params, x_enc, shape3, text_embedding)
    low, boxes, disc = heads_and_masks(params, masks_embeds, proj, shape3)
    nt = text_embedding.shape[0]
    # trilinear upsampling to image resolution (glue; matches
    # nnf.interpolate(mode='trilinear', align_corners=False) semantics).
    tgt = image.shape[1:]
    flat = low.reshape(nt * NQ, *low.shape[2:])
    full = jax.vmap(lambda m: jax.image.resize(m, tgt, method="trilinear"))(flat)
    full = full.reshape(nt, NQ, *tgt)
    return full, low, boxes, disc


@dataclasses.dataclass
class InstanceSamOutput:
    masks_logits: list
    masks_logits_low_res: list
    boxes: list
    disc_logit: list


def instance_sam_forward(params, images, patch_sizes, text_embeddings):
    masks_logits, masks_logits_low_res, boxes, disc_logit = [], [], [], []
    for i in range(len(images)):
        full, low, _boxes, _disc = _forward_one(
            params, images[i], text_embeddings[i], patch_size=tuple(patch_sizes[i]))
        masks_logits.append(full)
        masks_logits_low_res.append(low)
        boxes.append(_boxes)
        disc_logit.append(_disc)
    return InstanceSamOutput(masks_logits, masks_logits_low_res, boxes, disc_logit)


# ----------------------------------- main ------------------------------------ #

if __name__ == "__main__":
    key = jax.random.PRNGKey(0)
    kp, k1, k2, k3, k4 = jax.random.split(key, 5)
    params = init_params(kp, cin=1, patch=(4, 4, 4))

    images = [jax.random.normal(k1, (1, 16, 16, 16), jnp.float32),
              jax.random.normal(k2, (1, 16, 16, 16), jnp.float32)]
    patch_sizes = [(4, 4, 4), (4, 4, 4)]
    text_embeddings = [0.02 * jax.random.normal(k3, (3, C), jnp.float32),   # 3 targets
                       0.02 * jax.random.normal(k4, (2, C), jnp.float32)]   # 2 targets

    out = instance_sam_forward(params, images, patch_sizes, text_embeddings)
    for t in (out.masks_logits + out.masks_logits_low_res + out.boxes + out.disc_logit):
        jax.block_until_ready(t)

    assert out.masks_logits[0].shape == (3, NQ, 16, 16, 16)
    assert out.masks_logits[1].shape == (2, NQ, 16, 16, 16)
    assert out.masks_logits_low_res[0].shape == (3, NQ, 8, 8, 8)
    assert out.boxes[0].shape == (3, NQ, 6)
    assert out.boxes[1].shape == (2, NQ, 6)
    assert out.disc_logit[0].shape == (3, NQ - 1)
    assert out.disc_logit[1].shape == (2, NQ - 1)
    assert bool(jnp.all((out.boxes[0] >= 0) & (out.boxes[0] <= 1)))
    print("KERNEL_OK")
</pallas_src>

<mosaic_0001>
module attributes {stable_mosaic.version = 11 : i64} {
  func.func @_encoder_kernel(%arg0: memref<64x64xf32, #tpu.memory_space<vmem>>, %arg1: memref<64x32xf32, #tpu.memory_space<vmem>>, %arg2: memref<64x32xf32, #tpu.memory_space<vmem>>, %arg3: memref<1x32xf32, #tpu.memory_space<vmem>>, %arg4: memref<32x32xf32, #tpu.memory_space<vmem>>, %arg5: memref<1x32xf32, #tpu.memory_space<vmem>>, %arg6: memref<32x32xf32, #tpu.memory_space<vmem>>, %arg7: memref<1x32xf32, #tpu.memory_space<vmem>>, %arg8: memref<32x32xf32, #tpu.memory_space<vmem>>, %arg9: memref<1x32xf32, #tpu.memory_space<vmem>>, %arg10: memref<32x32xf32, #tpu.memory_space<vmem>>, %arg11: memref<1x32xf32, #tpu.memory_space<vmem>>, %arg12: memref<32x128xf32, #tpu.memory_space<vmem>>, %arg13: memref<1x128xf32, #tpu.memory_space<vmem>>, %arg14: memref<128x32xf32, #tpu.memory_space<vmem>>, %arg15: memref<1x32xf32, #tpu.memory_space<vmem>>, %arg16: memref<64x32xf32, #tpu.memory_space<vmem>>) attributes {dimension_semantics = [], scalar_prefetch = 0 : i64, scratch_operands = 0 : i64, tpu.core_type = #tpu.core_type<tc>} {
    %c0 = arith.constant 0 : index
    %c0_0 = arith.constant 0 : index
    %0 = vector.load %arg0[%c0, %c0_0] : memref<64x64xf32, #tpu.memory_space<vmem>>, vector<64x64xf32>
    %c0_1 = arith.constant 0 : index
    %c0_2 = arith.constant 0 : index
    %1 = vector.load %arg2[%c0_1, %c0_2] : memref<64x32xf32, #tpu.memory_space<vmem>>, vector<64x32xf32>
    %2 = arith.truncf %0 : vector<64x64xf32> to vector<64x64xbf16>
    %3 = arith.truncf %1 : vector<64x32xf32> to vector<64x32xbf16>
    %cst = arith.constant dense<0.000000e+00> : vector<64x32xf32>
    %4 = tpu.matmul %2, %3, %cst {dimension_numbers = #tpu.dot_dimension_numbers<[1], [0], [0], [1], [0, 0, 1, 1], [], []>} : vector<64x64xbf16>, vector<64x32xbf16>, vector<64x32xf32> -> vector<64x32xf32>
    %c0_3 = arith.constant 0 : index
    %c0_4 = arith.constant 0 : index
    %5 = vector.load %arg3[%c0_3, %c0_4] : memref<1x32xf32, #tpu.memory_space<vmem>>, vector<1x32xf32>
    %6 = vector.broadcast %5 : vector<1x32xf32> to vector<64x32xf32>
    %7 = arith.addf %4, %6 : vector<64x32xf32>
    %c0_5 = arith.constant 0 : index
    %c0_6 = arith.constant 0 : index
    %8 = vector.load %arg1[%c0_5, %c0_6] : memref<64x32xf32, #tpu.memory_space<vmem>>, vector<64x32xf32>
    %9 = arith.addf %7, %8 : vector<64x32xf32>
    %c0_7 = arith.constant 0 : index
    %c0_8 = arith.constant 0 : index
    %10 = vector.load %arg4[%c0_7, %c0_8] : memref<32x32xf32, #tpu.memory_space<vmem>>, vector<32x32xf32>
    %11 = arith.truncf %9 : vector<64x32xf32> to vector<64x32xbf16>
    %12 = arith.truncf %10 : vector<32x32xf32> to vector<32x32xbf16>
    %cst_9 = arith.constant dense<0.000000e+00> : vector<64x32xf32>
    %13 = tpu.matmul %11, %12, %cst_9 {dimension_numbers = #tpu.dot_dimension_numbers<[1], [0], [0], [1], [0, 0, 1, 1], [], []>} : vector<64x32xbf16>, vector<32x32xbf16>, vector<64x32xf32> -> vector<64x32xf32>
    %c0_10 = arith.constant 0 : index
    %c0_11 = arith.constant 0 : index
    %14 = vector.load %arg5[%c0_10, %c0_11] : memref<1x32xf32, #tpu.memory_space<vmem>>, vector<1x32xf32>
    %15 = vector.broadcast %14 : vector<1x32xf32> to vector<64x32xf32>
    %16 = arith.addf %13, %15 : vector<64x32xf32>
    %cst_12 = arith.constant 0.176776692 : f32
    %17 = vector.broadcast %cst_12 : f32 to vector<64x32xf32>
    %18 = arith.mulf %16, %17 : vector<64x32xf32>
    %c0_13 = arith.constant 0 : index
    %c0_14 = arith.constant 0 : index
    %19 = vector.load %arg6[%c0_13, %c0_14] : memref<32x32xf32, #tpu.memory_space<vmem>>, vector<32x32xf32>
    %20 = arith.truncf %9 : vector<64x32xf32> to vector<64x32xbf16>
    %21 = arith.truncf %19 : vector<32x32xf32> to vector<32x32xbf16>
    %cst_15 = arith.constant dense<0.000000e+00> : vector<64x32xf32>
    %22 = tpu.matmul %20, %21, %cst_15 {dimension_numbers = #tpu.dot_dimension_numbers<[1], [0], [0], [1], [0, 0, 1, 1], [], []>} : vector<64x32xbf16>, vector<32x32xbf16>, vector<64x32xf32> -> vector<64x32xf32>
    %c0_16 = arith.constant 0 : index
    %c0_17 = arith.constant 0 : index
    %23 = vector.load %arg7[%c0_16, %c0_17] : memref<1x32xf32, #tpu.memory_space<vmem>>, vector<1x32xf32>
    %24 = vector.broadcast %23 : vector<1x32xf32> to vector<64x32xf32>
    %25 = arith.addf %22, %24 : vector<64x32xf32>
    %c0_18 = arith.constant 0 : index
    %c0_19 = arith.constant 0 : index
    %26 = vector.load %arg8[%c0_18, %c0_19] : memref<32x32xf32, #tpu.memory_space<vmem>>, vector<32x32xf32>
    %27 = arith.truncf %9 : vector<64x32xf32> to vector<64x32xbf16>
    %28 = arith.truncf %26 : vector<32x32xf32> to vector<32x32xbf16>
    %cst_20 = arith.constant dense<0.000000e+00> : vector<64x32xf32>
    %29 = tpu.matmul %27, %28, %cst_20 {dimension_numbers = #tpu.dot_dimension_numbers<[1], [0], [0], [1], [0, 0, 1, 1], [], []>} : vector<64x32xbf16>, vector<32x32xbf16>, vector<64x32xf32> -> vector<64x32xf32>
    %c0_21 = arith.constant 0 : index
    %c0_22 = arith.constant 0 : index
    %30 = vector.load %arg9[%c0_21, %c0_22] : memref<1x32xf32, #tpu.memory_space<vmem>>, vector<1x32xf32>
    %31 = vector.broadcast %30 : vector<1x32xf32> to vector<64x32xf32>
    %32 = arith.addf %29, %31 : vector<64x32xf32>
    %33 = arith.truncf %18 : vector<64x32xf32> to vector<64x32xbf16>
    %34 = arith.truncf %25 : vector<64x32xf32> to vector<64x32xbf16>
    %cst_23 = arith.constant dense<0.000000e+00> : vector<64x64xf32>
    %35 = tpu.matmul %33, %34, %cst_23 {dimension_numbers = #tpu.dot_dimension_numbers<[1], [1], [0], [0], [0, 0, 1, 0], [], []>} : vector<64x32xbf16>, vector<64x32xbf16>, vector<64x64xf32> -> vector<64x64xf32>
    %cst_24 = arith.constant dense<0xFF800000> : vector<64xf32>
    %36 = vector.multi_reduction <maximumf>, %35, %cst_24 [1] : vector<64x64xf32> to vector<64xf32>
    %37 = vector.shape_cast %36 : vector<64xf32> to vector<64x1xf32>
    %38 = vector.broadcast %37 : vector<64x1xf32> to vector<64x64xf32>
    %39 = arith.subf %35, %38 : vector<64x64xf32>
    %40 = math.exp %39 : vector<64x64xf32>
    %cst_25 = arith.constant dense<0.000000e+00> : vector<64xf32>
    %41 = vector.multi_reduction <add>, %40, %cst_25 [1] : vector<64x64xf32> to vector<64xf32>
    %42 = vector.shape_cast %41 : vector<64xf32> to vector<64x1xf32>
    %43 = arith.truncf %40 : vector<64x64xf32> to vector<64x64xbf16>
    %44 = arith.truncf %32 : vector<64x32xf32> to vector<64x32xbf16>
    %cst_26 = arith.constant dense<0.000000e+00> : vector<64x32xf32>
    %45 = tpu.matmul %43, %44, %cst_26 {dimension_numbers = #tpu.dot_dimension_numbers<[1], [0], [0], [1], [0, 0, 1, 1], [], []>} : vector<64x64xbf16>, vector<64x32xbf16>, vector<64x32xf32> -> vector<64x32xf32>
    %46 = tpu.reciprocal %42 {approx = true} : vector<64x1xf32> -> vector<64x1xf32>
    %47 = vector.broadcast %46 : vector<64x1xf32> to vector<64x32xf32>
    %48 = arith.mulf %45, %47 : vector<64x32xf32>
    %c0_27 = arith.constant 0 : index
    %c0_28 = arith.constant 0 : index
    %49 = vector.load %arg10[%c0_27, %c0_28] : memref<32x32xf32, #tpu.memory_space<vmem>>, vector<32x32xf32>
    %50 = arith.truncf %48 : vector<64x32xf32> to vector<64x32xbf16>
    %51 = arith.truncf %49 : vector<32x32xf32> to vector<32x32xbf16>
    %cst_29 = arith.constant dense<0.000000e+00> : vector<64x32xf32>
    %52 = tpu.matmul %50, %51, %cst_29 {dimension_numbers = #tpu.dot_dimension_numbers<[1], [0], [0], [1], [0, 0, 1, 1], [], []>} : vector<64x32xbf16>, vector<32x32xbf16>, vector<64x32xf32> -> vector<64x32xf32>
    %53 = arith.addf %9, %52 : vector<64x32xf32>
    %c0_30 = arith.constant 0 : index
    %c0_31 = arith.constant 0 : index
    %54 = vector.load %arg11[%c0_30, %c0_31] : memref<1x32xf32, #tpu.memory_space<vmem>>, vector<1x32xf32>
    %55 = vector.broadcast %54 : vector<1x32xf32> to vector<64x32xf32>
    %56 = arith.addf %53, %55 : vector<64x32xf32>
    %c0_32 = arith.constant 0 : index
    %c0_33 = arith.constant 0 : index
    %57 = vector.load %arg12[%c0_32, %c0_33] : memref<32x128xf32, #tpu.memory_space<vmem>>, vector<32x128xf32>
    %58 = arith.truncf %56 : vector<64x32xf32> to vector<64x32xbf16>
    %59 = arith.truncf %57 : vector<32x128xf32> to vector<32x128xbf16>
    %cst_34 = arith.constant dense<0.000000e+00> : vector<64x128xf32>
    %60 = tpu.matmul %58, %59, %cst_34 {dimension_numbers = #tpu.dot_dimension_numbers<[1], [0], [0], [1], [0, 0, 1, 1], [], []>} : vector<64x32xbf16>, vector<32x128xbf16>, vector<64x128xf32> -> vector<64x128xf32>
    %c0_35 = arith.constant 0 : index
    %c0_36 = arith.constant 0 : index
    %61 = vector.load %arg13[%c0_35, %c0_36] : memref<1x128xf32, #tpu.memory_space<vmem>>, vector<1x128xf32>
    %62 = vector.broadcast %61 : vector<1x128xf32> to vector<64x128xf32>
    %63 = arith.addf %60, %62 : vector<64x128xf32>
    %cst_37 = arith.constant 0.000000e+00 : f32
    %64 = vector.broadcast %cst_37 : f32 to vector<64x128xf32>
    %65 = arith.maximumf %63, %64 : vector<64x128xf32>
    %c0_38 = arith.constant 0 : index
    %c0_39 = arith.constant 0 : index
    %66 = vector.load %arg14[%c0_38, %c0_39] : memref<128x32xf32, #tpu.memory_space<vmem>>, vector<128x32xf32>
    %67 = arith.truncf %65 : vector<64x128xf32> to vector<64x128xbf16>
    %68 = arith.truncf %66 : vector<128x32xf32> to vector<128x32xbf16>
    %cst_40 = arith.constant dense<0.000000e+00> : vector<64x32xf32>
    %69 = tpu.matmul %67, %68, %cst_40 {dimension_numbers = #tpu.dot_dimension_numbers<[1], [0], [0], [1], [0, 0, 1, 1], [], []>} : vector<64x128xbf16>, vector<128x32xbf16>, vector<64x32xf32> -> vector<64x32xf32>
    %70 = arith.addf %56, %69 : vector<64x32xf32>
    %c0_41 = arith.constant 0 : index
    %c0_42 = arith.constant 0 : index
    %71 = vector.load %arg15[%c0_41, %c0_42] : memref<1x32xf32, #tpu.memory_space<vmem>>, vector<1x32xf32>
    %72 = vector.broadcast %71 : vector<1x32xf32> to vector<64x32xf32>
    %73 = arith.addf %70, %72 : vector<64x32xf32>
    %c0_43 = arith.constant 0 : index
    %c0_44 = arith.constant 0 : index
    %74 = vector.load %arg16[%c0_43, %c0_44] : memref<64x32xf32, #tpu.memory_space<vmem>>, vector<64x32xf32>
    tpu.vector_store %arg16[%c0_43, %c0_44], %73 {strides = array<i32>} : memref<64x32xf32, #tpu.memory_space<vmem>>, vector<64x32xf32>,
    return
  }
}

module attributes {stable_mosaic.version = 11 : i64} {
  func.func @_decoder_kernel(%arg0: memref<21x32xf32, #tpu.memory_space<vmem>>, %arg1: memref<64x32xf32, #tpu.memory_space<vmem>>, %arg2: memref<64x32xf32, #tpu.memory_space<vmem>>, %arg3: memref<1x32xf32, #tpu.memory_space<vmem>>, %arg4: memref<32x32xf32, #tpu.memory_space<vmem>>, %arg5: memref<1x32xf32, #tpu.memory_space<vmem>>, %arg6: memref<32x32xf32, #tpu.memory_space<vmem>>, %arg7: memref<1x32xf32, #tpu.memory_space<vmem>>, %arg8: memref<32x32xf32, #tpu.memory_space<vmem>>, %arg9: memref<1x32xf32, #tpu.memory_space<vmem>>, %arg10: memref<32x32xf32, #tpu.memory_space<vmem>>, %arg11: memref<1x32xf32, #tpu.memory_space<vmem>>, %arg12: memref<32x128xf32, #tpu.memory_space<vmem>>, %arg13: memref<1x128xf32, #tpu.memory_space<vmem>>, %arg14: memref<128x32xf32, #tpu.memory_space<vmem>>, %arg15: memref<1x32xf32, #tpu.memory_space<vmem>>, %arg16: memref<32x32xf32, #tpu.memory_space<vmem>>, %arg17: memref<1x32xf32, #tpu.memory_space<vmem>>, %arg18: memref<21x32xf32, #tpu.memory_space<vmem>>, %arg19: memref<64x32xf32, #tpu.memory_space<vmem>>) attributes {dimension_semantics = [], scalar_prefetch = 0 : i64, scratch_operands = 0 : i64, tpu.core_type = #tpu.core_type<tc>} {
    %c0 = arith.constant 0 : index
    %c0_0 = arith.constant 0 : index
    %0 = vector.load %arg1[%c0, %c0_0] : memref<64x32xf32, #tpu.memory_space<vmem>>, vector<64x32xf32>
    %c0_1 = arith.constant 0 : index
    %c0_2 = arith.constant 0 : index
    %1 = vector.load %arg3[%c0_1, %c0_2] : memref<1x32xf32, #tpu.memory_space<vmem>>, vector<1x32xf32>
    %2 = vector.broadcast %1 : vector<1x32xf32> to vector<64x32xf32>
    %3 = arith.addf %0, %2 : vector<64x32xf32>
    %c0_3 = arith.constant 0 : index
    %c0_4 = arith.constant 0 : index
    %4 = vector.load %arg0[%c0_3, %c0_4] : memref<21x32xf32, #tpu.memory_space<vmem>>, vector<21x32xf32>
    %c0_5 = arith.constant 0 : index
    %c0_6 = arith.constant 0 : index
    %5 = vector.load %arg4[%c0_5, %c0_6] : memref<32x32xf32, #tpu.memory_space<vmem>>, vector<32x32xf32>
    %6 = arith.truncf %4 : vector<21x32xf32> to vector<21x32xbf16>
    %7 = arith.truncf %5 : vector<32x32xf32> to vector<32x32xbf16>
    %cst = arith.constant dense<0.000000e+00> : vector<21x32xf32>
    %8 = tpu.matmul %6, %7, %cst {dimension_numbers = #tpu.dot_dimension_numbers<[1], [0], [0], [1], [0, 0, 1, 1], [], []>} : vector<21x32xbf16>, vector<32x32xbf16>, vector<21x32xf32> -> vector<21x32xf32>
    %c0_7 = arith.constant 0 : index
    %c0_8 = arith.constant 0 : index
    %9 = vector.load %arg5[%c0_7, %c0_8] : memref<1x32xf32, #tpu.memory_space<vmem>>, vector<1x32xf32>
    %10 = vector.broadcast %9 : vector<1x32xf32> to vector<21x32xf32>
    %11 = arith.addf %8, %10 : vector<21x32xf32>
    %cst_9 = arith.constant 0.176776692 : f32
    %12 = vector.broadcast %cst_9 : f32 to vector<21x32xf32>
    %13 = arith.mulf %11, %12 : vector<21x32xf32>
    %c0_10 = arith.constant 0 : index
    %c0_11 = arith.constant 0 : index
    %14 = vector.load %arg2[%c0_10, %c0_11] : memref<64x32xf32, #tpu.memory_space<vmem>>, vector<64x32xf32>
    %15 = arith.addf %3, %14 : vector<64x32xf32>
    %c0_12 = arith.constant 0 : index
    %c0_13 = arith.constant 0 : index
    %16 = vector.load %arg6[%c0_12, %c0_13] : memref<32x32xf32, #tpu.memory_space<vmem>>, vector<32x32xf32>
    %17 = arith.truncf %15 : vector<64x32xf32> to vector<64x32xbf16>
    %18 = arith.truncf %16 : vector<32x32xf32> to vector<32x32xbf16>
    %cst_14 = arith.constant dense<0.000000e+00> : vector<64x32xf32>
    %19 = tpu.matmul %17, %18, %cst_14 {dimension_numbers = #tpu.dot_dimension_numbers<[1], [0], [0], [1], [0, 0, 1, 1], [], []>} : vector<64x32xbf16>, vector<32x32xbf16>, vector<64x32xf32> -> vector<64x32xf32>
    %c0_15 = arith.constant 0 : index
    %c0_16 = arith.constant 0 : index
    %20 = vector.load %arg7[%c0_15, %c0_16] : memref<1x32xf32, #tpu.memory_space<vmem>>, vector<1x32xf32>
    %21 = vector.broadcast %20 : vector<1x32xf32> to vector<64x32xf32>
    %22 = arith.addf %19, %21 : vector<64x32xf32>
    %c0_17 = arith.constant 0 : index
    %c0_18 = arith.constant 0 : index
    %23 = vector.load %arg8[%c0_17, %c0_18] : memref<32x32xf32, #tpu.memory_space<vmem>>, vector<32x32xf32>
    %24 = arith.truncf %3 : vector<64x32xf32> to vector<64x32xbf16>
    %25 = arith.truncf %23 : vector<32x32xf32> to vector<32x32xbf16>
    %cst_19 = arith.constant dense<0.000000e+00> : vector<64x32xf32>
    %26 = tpu.matmul %24, %25, %cst_19 {dimension_numbers = #tpu.dot_dimension_numbers<[1], [0], [0], [1], [0, 0, 1, 1], [], []>} : vector<64x32xbf16>, vector<32x32xbf16>, vector<64x32xf32> -> vector<64x32xf32>
    %c0_20 = arith.constant 0 : index
    %c0_21 = arith.constant 0 : index
    %27 = vector.load %arg9[%c0_20, %c0_21] : memref<1x32xf32, #tpu.memory_space<vmem>>, vector<1x32xf32>
    %28 = vector.broadcast %27 : vector<1x32xf32> to vector<64x32xf32>
    %29 = arith.addf %26, %28 : vector<64x32xf32>
    %30 = arith.truncf %13 : vector<21x32xf32> to vector<21x32xbf16>
    %31 = arith.truncf %22 : vector<64x32xf32> to vector<64x32xbf16>
    %cst_22 = arith.constant dense<0.000000e+00> : vector<21x64xf32>
    %32 = tpu.matmul %30, %31, %cst_22 {dimension_numbers = #tpu.dot_dimension_numbers<[1], [1], [0], [0], [0, 0, 1, 0], [], []>} : vector<21x32xbf16>, vector<64x32xbf16>, vector<21x64xf32> -> vector<21x64xf32>
    %cst_23 = arith.constant dense<0xFF800000> : vector<21xf32>
    %33 = vector.multi_reduction <maximumf>, %32, %cst_23 [1] : vector<21x64xf32> to vector<21xf32>
    %34 = vector.shape_cast %33 : vector<21xf32> to vector<21x1xf32>
    %35 = vector.broadcast %34 : vector<21x1xf32> to vector<21x64xf32>
    %36 = arith.subf %32, %35 : vector<21x64xf32>
    %37 = math.exp %36 : vector<21x64xf32>
    %cst_24 = arith.constant dense<0.000000e+00> : vector<21xf32>
    %38 = vector.multi_reduction <add>, %37, %cst_24 [1] : vector<21x64xf32> to vector<21xf32>
    %39 = vector.shape_cast %38 : vector<21xf32> to vector<21x1xf32>
    %40 = arith.truncf %37 : vector<21x64xf32> to vector<21x64xbf16>
    %41 = arith.truncf %29 : vector<64x32xf32> to vector<64x32xbf16>
    %cst_25 = arith.constant dense<0.000000e+00> : vector<21x32xf32>
    %42 = tpu.matmul %40, %41, %cst_25 {dimension_numbers = #tpu.dot_dimension_numbers<[1], [0], [0], [1], [0, 0, 1, 1], [], []>} : vector<21x64xbf16>, vector<64x32xbf16>, vector<21x32xf32> -> vector<21x32xf32>
    %43 = tpu.reciprocal %39 {approx = true} : vector<21x1xf32> -> vector<21x1xf32>
    %44 = vector.broadcast %43 : vector<21x1xf32> to vector<21x32xf32>
    %45 = arith.mulf %42, %44 : vector<21x32xf32>
    %c0_26 = arith.constant 0 : index
    %c0_27 = arith.constant 0 : index
    %46 = vector.load %arg10[%c0_26, %c0_27] : memref<32x32xf32, #tpu.memory_space<vmem>>, vector<32x32xf32>
    %47 = arith.truncf %45 : vector<21x32xf32> to vector<21x32xbf16>
    %48 = arith.truncf %46 : vector<32x32xf32> to vector<32x32xbf16>
    %cst_28 = arith.constant dense<0.000000e+00> : vector<21x32xf32>
    %49 = tpu.matmul %47, %48, %cst_28 {dimension_numbers = #tpu.dot_dimension_numbers<[1], [0], [0], [1], [0, 0, 1, 1], [], []>} : vector<21x32xbf16>, vector<32x32xbf16>, vector<21x32xf32> -> vector<21x32xf32>
    %50 = arith.addf %4, %49 : vector<21x32xf32>
    %c0_29 = arith.constant 0 : index
    %c0_30 = arith.constant 0 : index
    %51 = vector.load %arg11[%c0_29, %c0_30] : memref<1x32xf32, #tpu.memory_space<vmem>>, vector<1x32xf32>
    %52 = vector.broadcast %51 : vector<1x32xf32> to vector<21x32xf32>
    %53 = arith.addf %50, %52 : vector<21x32xf32>
    %c0_31 = arith.constant 0 : index
    %c0_32 = arith.constant 0 : index
    %54 = vector.load %arg12[%c0_31, %c0_32] : memref<32x128xf32, #tpu.memory_space<vmem>>, vector<32x128xf32>
    %55 = arith.truncf %53 : vector<21x32xf32> to vector<21x32xbf16>
    %56 = arith.truncf %54 : vector<32x128xf32> to vector<32x128xbf16>
    %cst_33 = arith.constant dense<0.000000e+00> : vector<21x128xf32>
    %57 = tpu.matmul %55, %56, %cst_33 {dimension_numbers = #tpu.dot_dimension_numbers<[1], [0], [0], [1], [0, 0, 1, 1], [], []>} : vector<21x32xbf16>, vector<32x128xbf16>, vector<21x128xf32> -> vector<21x128xf32>
    %c0_34 = arith.constant 0 : index
    %c0_35 = arith.constant 0 : index
    %58 = vector.load %arg13[%c0_34, %c0_35] : memref<1x128xf32, #tpu.memory_space<vmem>>, vector<1x128xf32>
    %59 = vector.broadcast %58 : vector<1x128xf32> to vector<21x128xf32>
    %60 = arith.addf %57, %59 : vector<21x128xf32>
    %cst_36 = arith.constant 0.000000e+00 : f32
    %61 = vector.broadcast %cst_36 : f32 to vector<21x128xf32>
    %62 = arith.maximumf %60, %61 : vector<21x128xf32>
    %c0_37 = arith.constant 0 : index
    %c0_38 = arith.constant 0 : index
    %63 = vector.load %arg14[%c0_37, %c0_38] : memref<128x32xf32, #tpu.memory_space<vmem>>, vector<128x32xf32>
    %64 = arith.truncf %62 : vector<21x128xf32> to vector<21x128xbf16>
    %65 = arith.truncf %63 : vector<128x32xf32> to vector<128x32xbf16>
    %cst_39 = arith.constant dense<0.000000e+00> : vector<21x32xf32>
    %66 = tpu.matmul %64, %65, %cst_39 {dimension_numbers = #tpu.dot_dimension_numbers<[1], [0], [0], [1], [0, 0, 1, 1], [], []>} : vector<21x128xbf16>, vector<128x32xbf16>, vector<21x32xf32> -> vector<21x32xf32>
    %67 = arith.addf %53, %66 : vector<21x32xf32>
    %c0_40 = arith.constant 0 : index
    %c0_41 = arith.constant 0 : index
    %68 = vector.load %arg15[%c0_40, %c0_41] : memref<1x32xf32, #tpu.memory_space<vmem>>, vector<1x32xf32>
    %69 = vector.broadcast %68 : vector<1x32xf32> to vector<21x32xf32>
    %70 = arith.addf %67, %69 : vector<21x32xf32>
    %c0_42 = arith.constant 0 : index
    %c0_43 = arith.constant 0 : index
    %71 = vector.load %arg18[%c0_42, %c0_43] : memref<21x32xf32, #tpu.memory_space<vmem>>, vector<21x32xf32>
    tpu.vector_store %arg18[%c0_42, %c0_43], %70 {strides = array<i32>} : memref<21x32xf32, #tpu.memory_space<vmem>>, vector<21x32xf32>,
    %c0_44 = arith.constant 0 : index
    %c0_45 = arith.constant 0 : index
    %72 = vector.load %arg16[%c0_44, %c0_45] : memref<32x32xf32, #tpu.memory_space<vmem>>, vector<32x32xf32>
    %73 = arith.truncf %3 : vector<64x32xf32> to vector<64x32xbf16>
    %74 = arith.truncf %72 : vector<32x32xf32> to vector<32x32xbf16>
    %cst_46 = arith.constant dense<0.000000e+00> : vector<64x32xf32>
    %75 = tpu.matmul %73, %74, %cst_46 {dimension_numbers = #tpu.dot_dimension_numbers<[1], [0], [0], [1], [0, 0, 1, 1], [], []>} : vector<64x32xbf16>, vector<32x32xbf16>, vector<64x32xf32> -> vector<64x32xf32>
    %c0_47 = arith.constant 0 : index
    %c0_48 = arith.constant 0 : index
    %76 = vector.load %arg17[%c0_47, %c0_48] : memref<1x32xf32, #tpu.memory_space<vmem>>, vector<1x32xf32>
    %77 = vector.broadcast %76 : vector<1x32xf32> to vector<64x32xf32>
    %78 = arith.addf %75, %77 : vector<64x32xf32>
    %c0_49 = arith.constant 0 : index
    %c0_50 = arith.constant 0 : index
    %79 = vector.load %arg19[%c0_49, %c0_50] : memref<64x32xf32, #tpu.memory_space<vmem>>, vector<64x32xf32>
    tpu.vector_store %arg19[%c0_49, %c0_50], %78 {strides = array<i32>} : memref<64x32xf32, #tpu.memory_space<vmem>>, vector<64x32xf32>,
    return
  }
}

module attributes {stable_mosaic.version = 11 : i64} {
  func.func @_heads_kernel(%arg0: memref<12x32xf32, #tpu.memory_space<vmem>>, %arg1: memref<64x32xf32, #tpu.memory_space<vmem>>, %arg2: memref<32x32xf32, #tpu.memory_space<vmem>>, %arg3: memref<1x32xf32, #tpu.memory_space<vmem>>, %arg4: memref<32x32xf32, #tpu.memory_space<vmem>>, %arg5: memref<1x32xf32, #tpu.memory_space<vmem>>, %arg6: memref<32x32xf32, #tpu.memory_space<vmem>>, %arg7: memref<1x32xf32, #tpu.memory_space<vmem>>, %arg8: memref<32x32xf32, #tpu.memory_space<vmem>>, %arg9: memref<1x32xf32, #tpu.memory_space<vmem>>, %arg10: memref<32x128xf32, #tpu.memory_space<vmem>>, %arg11: memref<32x32xf32, #tpu.memory_space<vmem>>, %arg12: memref<1x32xf32, #tpu.memory_space<vmem>>, %arg13: memref<32x128xf32, #tpu.memory_space<vmem>>, %arg14: memref<1x128xf32, #tpu.memory_space<vmem>>, %arg15: memref<12x64xf32, #tpu.memory_space<vmem>>, %arg16: memref<12x128xf32, #tpu.memory_space<vmem>>) attributes {dimension_semantics = [], scalar_prefetch = 0 : i64, scratch_operands = 0 : i64, tpu.core_type = #tpu.core_type<tc>} {
    %c0 = arith.constant 0 : index
    %c0_0 = arith.constant 0 : index
    %0 = vector.load %arg0[%c0, %c0_0] : memref<12x32xf32, #tpu.memory_space<vmem>>, vector<12x32xf32>
    %c0_1 = arith.constant 0 : index
    %c0_2 = arith.constant 0 : index
    %1 = vector.load %arg2[%c0_1, %c0_2] : memref<32x32xf32, #tpu.memory_space<vmem>>, vector<32x32xf32>
    %2 = arith.truncf %0 : vector<12x32xf32> to vector<12x32xbf16>
    %3 = arith.truncf %1 : vector<32x32xf32> to vector<32x32xbf16>
    %cst = arith.constant dense<0.000000e+00> : vector<12x32xf32>
    %4 = tpu.matmul %2, %3, %cst {dimension_numbers = #tpu.dot_dimension_numbers<[1], [0], [0], [1], [0, 0, 1, 1], [], []>} : vector<12x32xbf16>, vector<32x32xbf16>, vector<12x32xf32> -> vector<12x32xf32>
    %c0_3 = arith.constant 0 : index
    %c0_4 = arith.constant 0 : index
    %5 = vector.load %arg3[%c0_3, %c0_4] : memref<1x32xf32, #tpu.memory_space<vmem>>, vector<1x32xf32>
    %6 = vector.broadcast %5 : vector<1x32xf32> to vector<12x32xf32>
    %7 = arith.addf %4, %6 : vector<12x32xf32>
    %cst_5 = arith.constant 0.000000e+00 : f32
    %8 = vector.broadcast %cst_5 : f32 to vector<12x32xf32>
    %9 = arith.maximumf %7, %8 : vector<12x32xf32>
    %c0_6 = arith.constant 0 : index
    %c0_7 = arith.constant 0 : index
    %10 = vector.load %arg4[%c0_6, %c0_7] : memref<32x32xf32, #tpu.memory_space<vmem>>, vector<32x32xf32>
    %11 = arith.truncf %9 : vector<12x32xf32> to vector<12x32xbf16>
    %12 = arith.truncf %10 : vector<32x32xf32> to vector<32x32xbf16>
    %cst_8 = arith.constant dense<0.000000e+00> : vector<12x32xf32>
    %13 = tpu.matmul %11, %12, %cst_8 {dimension_numbers = #tpu.dot_dimension_numbers<[1], [0], [0], [1], [0, 0, 1, 1], [], []>} : vector<12x32xbf16>, vector<32x32xbf16>, vector<12x32xf32> -> vector<12x32xf32>
    %c0_9 = arith.constant 0 : index
    %c0_10 = arith.constant 0 : index
    %14 = vector.load %arg5[%c0_9, %c0_10] : memref<1x32xf32, #tpu.memory_space<vmem>>, vector<1x32xf32>
    %15 = vector.broadcast %14 : vector<1x32xf32> to vector<12x32xf32>
    %16 = arith.addf %13, %15 : vector<12x32xf32>
    %c0_11 = arith.constant 0 : index
    %c0_12 = arith.constant 0 : index
    %17 = vector.load %arg1[%c0_11, %c0_12] : memref<64x32xf32, #tpu.memory_space<vmem>>, vector<64x32xf32>
    %18 = arith.truncf %16 : vector<12x32xf32> to vector<12x32xbf16>
    %19 = arith.truncf %17 : vector<64x32xf32> to vector<64x32xbf16>
    %cst_13 = arith.constant dense<0.000000e+00> : vector<12x64xf32>
    %20 = tpu.matmul %18, %19, %cst_13 {dimension_numbers = #tpu.dot_dimension_numbers<[1], [1], [0], [0], [0, 0, 1, 0], [], []>} : vector<12x32xbf16>, vector<64x32xbf16>, vector<12x64xf32> -> vector<12x64xf32>
    %c0_14 = arith.constant 0 : index
    %c0_15 = arith.constant 0 : index
    %21 = vector.load %arg15[%c0_14, %c0_15] : memref<12x64xf32, #tpu.memory_space<vmem>>, vector<12x64xf32>
    tpu.vector_store %arg15[%c0_14, %c0_15], %20 {strides = array<i32>} : memref<12x64xf32, #tpu.memory_space<vmem>>, vector<12x64xf32>,
    %c0_16 = arith.constant 0 : index
    %c0_17 = arith.constant 0 : index
    %22 = vector.load %arg6[%c0_16, %c0_17] : memref<32x32xf32, #tpu.memory_space<vmem>>, vector<32x32xf32>
    %23 = arith.truncf %0 : vector<12x32xf32> to vector<12x32xbf16>
    %24 = arith.truncf %22 : vector<32x32xf32> to vector<32x32xbf16>
    %cst_18 = arith.constant dense<0.000000e+00> : vector<12x32xf32>
    %25 = tpu.matmul %23, %24, %cst_18 {dimension_numbers = #tpu.dot_dimension_numbers<[1], [0], [0], [1], [0, 0, 1, 1], [], []>} : vector<12x32xbf16>, vector<32x32xbf16>, vector<12x32xf32> -> vector<12x32xf32>
    %c0_19 = arith.constant 0 : index
    %c0_20 = arith.constant 0 : index
    %26 = vector.load %arg7[%c0_19, %c0_20] : memref<1x32xf32, #tpu.memory_space<vmem>>, vector<1x32xf32>
    %27 = vector.broadcast %26 : vector<1x32xf32> to vector<12x32xf32>
    %28 = arith.addf %25, %27 : vector<12x32xf32>
    %cst_21 = arith.constant 0.000000e+00 : f32
    %29 = vector.broadcast %cst_21 : f32 to vector<12x32xf32>
    %30 = arith.maximumf %28, %29 : vector<12x32xf32>
    %c0_22 = arith.constant 0 : index
    %c0_23 = arith.constant 0 : index
    %31 = vector.load %arg8[%c0_22, %c0_23] : memref<32x32xf32, #tpu.memory_space<vmem>>, vector<32x32xf32>
    %32 = arith.truncf %30 : vector<12x32xf32> to vector<12x32xbf16>
    %33 = arith.truncf %31 : vector<32x32xf32> to vector<32x32xbf16>
    %cst_24 = arith.constant dense<0.000000e+00> : vector<12x32xf32>
    %34 = tpu.matmul %32, %33, %cst_24 {dimension_numbers = #tpu.dot_dimension_numbers<[1], [0], [0], [1], [0, 0, 1, 1], [], []>} : vector<12x32xbf16>, vector<32x32xbf16>, vector<12x32xf32> -> vector<12x32xf32>
    %c0_25 = arith.constant 0 : index
    %c0_26 = arith.constant 0 : index
    %35 = vector.load %arg9[%c0_25, %c0_26] : memref<1x32xf32, #tpu.memory_space<vmem>>, vector<1x32xf32>
    %36 = vector.broadcast %35 : vector<1x32xf32> to vector<12x32xf32>
    %37 = arith.addf %34, %36 : vector<12x32xf32>
    %cst_27 = arith.constant 0.000000e+00 : f32
    %38 = vector.broadcast %cst_27 : f32 to vector<12x32xf32>
    %39 = arith.maximumf %37, %38 : vector<12x32xf32>
    %c0_28 = arith.constant 0 : index
    %c0_29 = arith.constant 0 : index
    %40 = vector.load %arg11[%c0_28, %c0_29] : memref<32x32xf32, #tpu.memory_space<vmem>>, vector<32x32xf32>
    %41 = arith.truncf %0 : vector<12x32xf32> to vector<12x32xbf16>
    %42 = arith.truncf %40 : vector<32x32xf32> to vector<32x32xbf16>
    %cst_30 = arith.constant dense<0.000000e+00> : vector<12x32xf32>
    %43 = tpu.matmul %41, %42, %cst_30 {dimension_numbers = #tpu.dot_dimension_numbers<[1], [0], [0], [1], [0, 0, 1, 1], [], []>} : vector<12x32xbf16>, vector<32x32xbf16>, vector<12x32xf32> -> vector<12x32xf32>
    %c0_31 = arith.constant 0 : index
    %c0_32 = arith.constant 0 : index
    %44 = vector.load %arg12[%c0_31, %c0_32] : memref<1x32xf32, #tpu.memory_space<vmem>>, vector<1x32xf32>
    %45 = vector.broadcast %44 : vector<1x32xf32> to vector<12x32xf32>
    %46 = arith.addf %43, %45 : vector<12x32xf32>
    %cst_33 = arith.constant 0.000000e+00 : f32
    %47 = vector.broadcast %cst_33 : f32 to vector<12x32xf32>
    %48 = arith.maximumf %46, %47 : vector<12x32xf32>
    %c0_34 = arith.constant 0 : index
    %c0_35 = arith.constant 0 : index
    %49 = vector.load %arg10[%c0_34, %c0_35] : memref<32x128xf32, #tpu.memory_space<vmem>>, vector<32x128xf32>
    %50 = arith.truncf %39 : vector<12x32xf32> to vector<12x32xbf16>
    %51 = arith.truncf %49 : vector<32x128xf32> to vector<32x128xbf16>
    %cst_36 = arith.constant dense<0.000000e+00> : vector<12x128xf32>
    %52 = tpu.matmul %50, %51, %cst_36 {dimension_numbers = #tpu.dot_dimension_numbers<[1], [0], [0], [1], [0, 0, 1, 1], [], []>} : vector<12x32xbf16>, vector<32x128xbf16>, vector<12x128xf32> -> vector<12x128xf32>
    %c0_37 = arith.constant 0 : index
    %c0_38 = arith.constant 0 : index
    %53 = vector.load %arg13[%c0_37, %c0_38] : memref<32x128xf32, #tpu.memory_space<vmem>>, vector<32x128xf32>
    %54 = arith.truncf %48 : vector<12x32xf32> to vector<12x32xbf16>
    %55 = arith.truncf %53 : vector<32x128xf32> to vector<32x128xbf16>
    %cst_39 = arith.constant dense<0.000000e+00> : vector<12x128xf32>
    %56 = tpu.matmul %54, %55, %cst_39 {dimension_numbers = #tpu.dot_dimension_numbers<[1], [0], [0], [1], [0, 0, 1, 1], [], []>} : vector<12x32xbf16>, vector<32x128xbf16>, vector<12x128xf32> -> vector<12x128xf32>
    %57 = arith.addf %52, %56 : vector<12x128xf32>
    %c0_40 = arith.constant 0 : index
    %c0_41 = arith.constant 0 : index
    %58 = vector.load %arg14[%c0_40, %c0_41] : memref<1x128xf32, #tpu.memory_space<vmem>>, vector<1x128xf32>
    %59 = vector.broadcast %58 : vector<1x128xf32> to vector<12x128xf32>
    %60 = arith.addf %57, %59 : vector<12x128xf32>
    %61 = tpu.iota {dimensions = array<i32: 1>} : vector<12x128xi32>
    %c6_i32 = arith.constant 6 : i32
    %62 = vector.broadcast %c6_i32 : i32 to vector<12x128xi32>
    %63 = arith.cmpi slt, %61, %62 : vector<12x128xi32>
    %64 = arith.negf %60 : vector<12x128xf32>
    %65 = math.exp %64 : vector<12x128xf32>
    %cst_42 = arith.constant 1.000000e+00 : f32
    %66 = vector.broadcast %cst_42 : f32 to vector<12x128xf32>
    %67 = arith.addf %66, %65 : vector<12x128xf32>
    %68 = arith.divf %66, %67 : vector<12x128xf32>
    %69 = arith.select %63, %68, %60 : vector<12x128xi1>, vector<12x128xf32>
    %c0_43 = arith.constant 0 : index
    %c0_44 = arith.constant 0 : index
    %70 = vector.load %arg16[%c0_43, %c0_44] : memref<12x128xf32, #tpu.memory_space<vmem>>, vector<12x128xf32>
    tpu.vector_store %arg16[%c0_43, %c0_44], %69 {strides = array<i32>} : memref<12x128xf32, #tpu.memory_space<vmem>>, vector<12x128xf32>,
    return
  }
}

</mosaic_0001>

<bundles_post_ra>
// kernel: _forward_one.3
= control target key start
LH: loop header
LB: loop body
LE: loop exit
PB: predicated region body
PF: predicated region fallthrough
CT: control target
= control target key end

     0   :  { %vm85_vm0 = vcmask 523264   ;;  %vm196_vm1 = vcmask 261120   ;;  %s1776_s2 = inlined_call_operand.vmem [shape: f32[64,32], index: 2, kind: input, shape index: {}]   ;;  %s1777_s0 = inlined_call_operand.vmem [shape: f32[64,64], index: 0, kind: input, shape index: {}]   ;;  %s1778_s4 = inlined_call_operand.vmem [shape: f32[32,32], index: 4, kind: input, shape index: {}]   ;;  %s1779_s8 = inlined_call_operand.vmem [shape: f32[32,32], index: 8, kind: input, shape index: {}]   ;;  %s1780_s6 = inlined_call_operand.vmem [shape: f32[32,32], index: 6, kind: input, shape index: {}]   ;;  %s1781_s3 = inlined_call_operand.vmem [shape: f32[1,32], index: 3, kind: input, shape index: {}]   ;;  %s1782_s1 = inlined_call_operand.vmem [shape: f32[64,32], index: 1, kind: input, shape index: {}]   ;;  %s1783_s5 = inlined_call_operand.vmem [shape: f32[1,32], index: 5, kind: input, shape index: {}]   ;;  %s1784_s9 = inlined_call_operand.vmem [shape: f32[1,32], index: 9, kind: input, shape index: {}]   ;;  %s1785_s7 = inlined_call_operand.vmem [shape: f32[1,32], index: 7, kind: input, shape index: {}]   ;;  %s1786_s10 = inlined_call_operand.vmem [shape: f32[32,32], index: 10, kind: input, shape index: {}]   ;;  %s1787_s12 = inlined_call_operand.vmem [shape: f32[32,128], index: 12, kind: input, shape index: {}]   ;;  %s1788_s14 = inlined_call_operand.vmem [shape: f32[128,32], index: 14, kind: input, shape index: {}]   ;;  %s1789_s11 = inlined_call_operand.vmem [shape: f32[1,32], index: 11, kind: input, shape index: {}]   ;;  %s1790_s13 = inlined_call_operand.vmem [shape: f32[1,128], index: 13, kind: input, shape index: {}]   ;;  %s1791_s15 = inlined_call_operand.vmem [shape: f32[1,32], index: 15, kind: input, shape index: {}]   ;;  %s1792_s16 = inlined_call_operand.vmem [shape: f32[64,32], index: 16, kind: output, shape index: {}]  }
   0x1   :  { %1794 = sst [smem:[#allocation2_spill]] %s1776_s2  ;;  %v54_v8 = vld [vmem:[%s1777_s0] sm:$0xff]  ;;  %v55_v9 = vld [vmem:[%s1777_s0 + $0x8] sm:$0xff]  ;;  %v56_v18 = vld [vmem:[%s1777_s0 + $0x10] sm:$0xff] }
   0x2   :  { %s1795_s23 = sld [smem:[#allocation2_spill]]  ;;  %v70_v10 = vpack.c.bf16 %v55_v9, %v54_v8  ;;  %v58_v11 = vld [vmem:[%s1777_s0 + $0x20] sm:$0xff]  ;;  %v59_v12 = vld [vmem:[%s1777_s0 + $0x28] sm:$0xff]  ;;  %v57_v19 = vld [vmem:[%s1777_s0 + $0x18] sm:$0xff] }
   0x3   :  { %v72_v14 = vpack.c.bf16 %v59_v12, %v58_v11  ;;  %v60_v20 = vld [vmem:[%s1777_s0 + $0x30] sm:$0xff]  ;;  %v61_v21 = vld [vmem:[%s1777_s0 + $0x38] sm:$0xff]  ;;  %v71_v22 = vpack.c.bf16 %v57_v19, %v56_v18  ;;  %v179_v24 = vld [vmem:[%s1778_s4] sm:$0xff] }
   0x4   :  { %1161 = vmatprep.mubr.msk.bf16.mxu0 %vm85_vm0, %v70_v10  ;;  %v73_v23 = vpack.c.bf16 %v61_v21, %v60_v20  ;;  %v180_v25 = vld [vmem:[%s1778_s4 + $0x8] sm:$0xff]  ;;  %v360_v27 = vld [vmem:[%s1779_s8] sm:$0xff]  ;;  %v181_v30 = vld [vmem:[%s1778_s4 + $0x10] sm:$0xff] }
   0x5   :  { %1165 = vmatprep.mubr.msk.bf16.mxu1 %vm85_vm0, %v72_v14  ;;  %v187_v26 = vpack.c.bf16 %v180_v25, %v179_v24  ;;  %v361_v28 = vld [vmem:[%s1779_s8 + $0x8] sm:$0xff]  ;;  %v182_v31 = vld [vmem:[%s1778_s4 + $0x18] sm:$0xff]  ;;  %v362_v33 = vld [vmem:[%s1779_s8 + $0x10] sm:$0xff] }
   0x6   :  { %v364_v29 = vpack.c.bf16 %v361_v28, %v360_v27  ;;  %v188_v32 = vpack.c.bf16 %v182_v31, %v181_v30  ;;  %v363_v34 = vld [vmem:[%s1779_s8 + $0x18] sm:$0xff]  ;;  %v282_v36 = vld [vmem:[%s1780_s6] sm:$0xff]  ;;  %v283_v37 = vld [vmem:[%s1780_s6 + $0x8] sm:$0xff] }
   0x7   :  { %v365_v35 = vpack.c.bf16 %v363_v34, %v362_v33  ;;  %v286_v38 = vpack.c.bf16 %v283_v37, %v282_v36  ;;  %v1048_v39 = vld [vmem:[%s1781_s3] ss:$0 sm:$0xff]  ;;  %v166_v47 = vld [vmem:[%s1782_s1 + $0x18] sm:$0xff]  ;;  %v164_v54 = vld [vmem:[%s1782_s1 + $0x8] sm:$0xff] }
   0x8   :  { %v62_v0 = vld [vmem:[%s1795_s23] sm:$0xff]  ;;  %v63_v1 = vld [vmem:[%s1795_s23 + $0x8] sm:$0xff]  ;;  %v64_v2 = vld [vmem:[%s1795_s23 + $0x10] sm:$0xff] }
   0x9   :  { %v74_v3 = vpack.c.bf16 %v63_v1, %v62_v0  ;;  %v65_v4 = vld [vmem:[%s1795_s23 + $0x18] sm:$0xff]  ;;  %v66_v6 = vld [vmem:[%s1795_s23 + $0x20] sm:$0xff]  ;;  %v67_v7 = vld [vmem:[%s1795_s23 + $0x28] sm:$0xff] }
   0xa   :  { %v75_v5 = vpack.c.bf16 %v65_v4, %v64_v2  ;;  %v76_v13 = vpack.c.bf16 %v67_v7, %v66_v6  ;;  %v68_v15 = vld [vmem:[%s1795_s23 + $0x30] sm:$0xff]  ;;  %v69_v16 = vld [vmem:[%s1795_s23 + $0x38] sm:$0xff]  ;;  %v167_v44 = vld [vmem:[%s1782_s1 + $0x20] sm:$0xff] }
   0xb   :  { %1153 = vmatprep.subr.bf16.mxu0 %v74_v3  ;;  %1285 = vmatprep.subr.bf16.mxu1 %v74_v3  ;;  %v77_v17 = vpack.c.bf16 %v69_v16, %v68_v15  ;;  %v163_v51 = vld [vmem:[%s1782_s1] sm:$0xff]  ;;  %v168_v56 = vld [vmem:[%s1782_s1 + $0x28] sm:$0xff]  ;;  %v165_v57 = vld [vmem:[%s1782_s1 + $0x10] sm:$0xff] }
   0xc   :  { %1154 = vmatpush3.bf16.msra.mxu0 %v74_v3  ;;  %1289 = vmatpush3.bf16.msra.mxu1 %v74_v3  ;;  %v284_v1 = vld [vmem:[%s1780_s6 + $0x10] sm:$0xff]  ;;  %v285_v2 = vld [vmem:[%s1780_s6 + $0x18] sm:$0xff]  ;;  %v1053_v15 = vld [vmem:[%s1783_s5] ss:$0 sm:$0xff] }
   0xd   :  { %1155 = vmatprep.subr.bf16.mxu0 %v75_v5  ;;  %1286 = vmatprep.subr.bf16.mxu1 %v75_v5  ;;  %v287_v9 = vpack.c.bf16 %v285_v2, %v284_v1  ;;  %v169_v10 = vld [vmem:[%s1782_s1 + $0x30] sm:$0xff]  ;;  %v170_v11 = vld [vmem:[%s1782_s1 + $0x38] sm:$0xff]  ;;  %v1063_v18 = vld [vmem:[%s1784_s9] ss:$0 sm:$0xff] }
  0x10   :  { %1156 = vmatpush3.bf16.msra.mxu0 %v75_v5  ;;  %1290 = vmatpush3.bf16.msra.mxu1 %v75_v5 }
  0x11   :  { %1157 = vmatprep.subr.bf16.mxu0 %v76_v13  ;;  %1287 = vmatprep.subr.bf16.mxu1 %v76_v13 }
  0x14   :  { %1158 = vmatpush3.bf16.msra.mxu0 %v76_v13  ;;  %1291 = vmatpush3.bf16.msra.mxu1 %v76_v13 }
  0x15   :  { %1159 = vmatprep.subr.bf16.mxu0 %v77_v17  ;;  %1288 = vmatprep.subr.bf16.mxu1 %v77_v17 }
  0x18   :  { %1160 = vmatpush3.bf16.msra.mxu0 %v77_v17  ;;  %1292 = vmatpush3.bf16.msra.mxu1 %v77_v17 }
  0x19   :  { %1169 = vmatprep.subr.bf16.mxu1 %v187_v26  ;;  %1193 = vmatprep.subr.bf16.mxu0 %v364_v29 }
  0x1b   :  { %1162 = vmatmul.mubr.msk.bf16.vlgmr.msra.gmra.mrb[0].mxu0 %vm85_vm0, %v71_v22  ;;  %1166 = vmatmul.mubr.msk.bf16.vlgmr.msra.gmra.mrb[0].mxu1 %vm85_vm0, %v73_v23 }
  0x1c   :  { %1170 = vmatpush3.bf16.msra.mxu1 %v187_v26  ;;  %1194 = vmatpush3.bf16.msra.mxu0 %v364_v29 }
  0x1d   :  { %1171 = vmatprep.subr.bf16.mxu1 %v188_v32  ;;  %1195 = vmatprep.subr.bf16.mxu0 %v365_v35 }
  0x20   :  { %1172 = vmatpush3.bf16.msra.mxu1 %v188_v32  ;;  %1196 = vmatpush3.bf16.msra.mxu0 %v365_v35 }
  0x21   :  { %1181 = vmatprep.subr.bf16.mxu1 %v286_v38 }
  0xee   :  { %v1163_v40 = vpop.f32.mrb[0].mxu0  ;;  %v1167_v41 = vpop.f32.mrb[0].mxu1 }
  0xef   :  { %v132_v42 = vpop.f32.mrb[1].mxu0  ;;  %v148_v43 = vpop.f32.mrb[1].mxu1  ;;  %v141_v50 = vadd.f32 %v1163_v40, %v1048_v39  ;;  %v157_v7 = vadd.f32 %v1167_v41, %v1048_v39 }
  0xf0   :  { %v133_v45 = vadd.f32 %v1048_v39, %v132_v42  ;;  %v1164_v46 = vpop.f32.mrb[2].mxu0  ;;  %v149_v48 = vadd.f32 %v1048_v39, %v148_v43  ;;  %v1168_v49 = vpop.f32.mrb[2].mxu1 }
  0xf1   :  { %v144_v52 = vadd.f32 %v1164_v46, %v1048_v39  ;;  %v135_v53 = vpop.f32.mrb[3].mxu0  ;;  %v151_v55 = vpop.f32.mrb[3].mxu1  ;;  %v1533_v3 = vadd.f32 %v165_v57, %v141_v50  ;;  %v160_v8 = vadd.f32 %v1168_v49, %v1048_v39  ;;  %v1552_v12 = vadd.f32 %v169_v10, %v157_v7 }
  0xf2   :  { %v136_v58 = vadd.f32 %v1048_v39, %v135_v53  ;;  %v1517_v59 = vadd.f32 %v167_v44, %v149_v48  ;;  %v152_v60 = vadd.f32 %v1048_v39, %v151_v55  ;;  %v1521_v62 = vadd.f32 %v163_v51, %v133_v45 }
  0xf3   :  { %v1519_v61 = vadd.f32 %v166_v47, %v144_v52  ;;  %v1554_v13 = vadd.f32 %v170_v11, %v160_v8  ;;  %v1058_v8 = vld [vmem:[%s1785_s7] ss:$0 sm:$0xff] }
  0xf4   :  { %v1523_v63 = vadd.f32 %v164_v54, %v136_v58  ;;  %v1525_v0 = vadd.f32 %v168_v56, %v152_v60 }
  0xf5   :  { %v184_v6 = vpack.c.bf16 %v1519_v61, %v1533_v3  ;;  %v186_v14 = vpack.c.bf16 %v1554_v13, %v1552_v12 }
  0xf6   :  { %v183_v4 = vpack.c.bf16 %v1523_v63, %v1521_v62  ;;  %v185_v5 = vpack.c.bf16 %v1525_v0, %v1517_v59 }
  0xf8   :  { %1173 = vmatprep.mubr.msk.bf16.mxu1 %vm196_vm1, %v183_v4  ;;  %1197 = vmatprep.mubr.msk.bf16.mxu0 %vm196_vm1, %v183_v4 }
  0xf9   :  { %1174 = vmatmul.mubr.msk.bf16.vlgmr.msra.gmra.mrb[4].mxu1 %vm196_vm1, %v184_v6  ;;  %1198 = vmatmul.mubr.msk.bf16.vlgmr.msra.gmra.mrb[4].mxu0 %vm196_vm1, %v184_v6 }
  0xfa   :  { %1182 = vmatpush3.bf16.msra.mxu1 %v286_v38  ;;  %1177 = vmatprep.mubr.msk.bf16.mxu1 %vm196_vm1, %v185_v5 }
  0xfb   :  { %1201 = vmatprep.mubr.msk.bf16.mxu0 %vm196_vm1, %v185_v5  ;;  %1183 = vmatprep.subr.bf16.mxu1 %v287_v9 }
  0xfe   :  { %1184 = vmatpush3.bf16.msra.mxu1 %v287_v9 }
 0x101   :  { %1178 = vmatmul.mubr.msk.bf16.gmra.mrb[8].mxu1 %vm196_vm1, %v186_v14  ;;  %1202 = vmatmul.mubr.msk.bf16.gmra.mrb[8].mxu0 %vm196_vm1, %v186_v14 }
 0x102   :  { %1185 = vmatprep.mubr.msk.bf16.mxu1 %vm196_vm1, %v183_v4 }
 0x109   :  { %1186 = vmatmul.mubr.msk.bf16.vlgmr.msra.gmra.mrb[12].mxu1 %vm196_vm1, %v184_v6 }
 0x10a   :  { %1189 = vmatprep.mubr.msk.bf16.mxu1 %vm196_vm1, %v185_v5 }
 0x111   :  { %1190 = vmatmul.mubr.msk.bf16.gmra.mrb[16].mxu1 %vm196_vm1, %v186_v14 }
 0x1cc   :  { %v1175_v16 = vpop.f32.mrb[4].mxu1  ;;  %v1199_v17 = vpop.f32.mrb[4].mxu0 }
 0x1cd   :  { %v252_v19 = vadd.f32 %v1175_v16, %v1053_v15  ;;  %v243_v20 = vpop.f32.mrb[5].mxu1  ;;  %v407_v21 = vpop.f32.mrb[5].mxu0  ;;  %v416_v25 = vadd.f32 %v1199_v17, %v1063_v18 }
 0x1ce   :  { %v244_v22 = vadd.f32 %v1053_v15, %v243_v20  ;;  %v1176_v23 = vpop.f32.mrb[6].mxu1  ;;  %v1200_v24 = vpop.f32.mrb[6].mxu0  ;;  %v408_v30 = vadd.f32 %v1063_v18, %v407_v21 }
 0x1cf   :  { %v255_v26 = vadd.f32 %v1176_v23, %v1053_v15  ;;  %v419_v27 = vadd.f32 %v1200_v24, %v1063_v18  ;;  %v246_v28 = vpop.f32.mrb[7].mxu1  ;;  %v410_v29 = vpop.f32.mrb[7].mxu0  ;;  %v1571_v33 = vmul.f32 0.17677669, %v252_v19 }
 0x1d0   :  { %v247_v31 = vadd.f32 %v1053_v15, %v246_v28  ;;  %v411_v32 = vadd.f32 %v1063_v18, %v410_v29  ;;  %v274_v36 = vmul.f32 0.17677669, %v244_v22 }
 0x1d1   :  { %v1573_v34 = vmul.f32 0.17677669, %v255_v26  ;;  %v612_v35 = vpack.c.bf16 %v419_v27, %v416_v25 }
 0x1d2   :  { %v275_v37 = vmul.f32 0.17677669, %v247_v31  ;;  %v611_v38 = vpack.c.bf16 %v411_v32, %v408_v30 }
 0x1d3   :  { %v439_v39 = vpack.c.bf16 %v1573_v34, %v1571_v33 }
 0x1d4   :  { %v438_v40 = vpack.c.bf16 %v275_v37, %v274_v36  ;;  %v1179_v41 = vpop.f32.mrb[8].mxu1  ;;  %v1203_v42 = vpop.f32.mrb[8].mxu0  ;;  %1221 = vmatprep.subr.bf16.mxu0 %v611_v38 }
 0x1d5   :  { %v268_v43 = vadd.f32 %v1179_v41, %v1053_v15  ;;  %v259_v44 = vpop.f32.mrb[9].mxu1  ;;  %v423_v45 = vpop.f32.mrb[9].mxu0  ;;  %1222 = vmatpush3.bf16.msra.mxu0 %v611_v38  ;;  %v432_v49 = vadd.f32 %v1203_v42, %v1063_v18 }
 0x1d6   :  { %v260_v46 = vadd.f32 %v1053_v15, %v259_v44  ;;  %v1180_v47 = vpop.f32.mrb[10].mxu1  ;;  %v1204_v48 = vpop.f32.mrb[10].mxu0  ;;  %1213 = vmatprep.mubr.msk.bf16.mxu1 %vm196_vm1, %v438_v40  ;;  %1223 = vmatprep.subr.bf16.mxu0 %v612_v35  ;;  %v424_v54 = vadd.f32 %v1063_v18, %v423_v45 }
 0x1d7   :  { %v271_v50 = vadd.f32 %v1180_v47, %v1053_v15  ;;  %v435_v51 = vadd.f32 %v1204_v48, %v1063_v18  ;;  %v262_v52 = vpop.f32.mrb[11].mxu1  ;;  %v426_v53 = vpop.f32.mrb[11].mxu0  ;;  %v280_v57 = vmul.f32 0.17677669, %v268_v43 }
 0x1d8   :  { %v263_v55 = vadd.f32 %v1053_v15, %v262_v52  ;;  %v427_v56 = vadd.f32 %v1063_v18, %v426_v53  ;;  %v278_v1 = vmul.f32 0.17677669, %v260_v46 }
 0x1d9   :  { %v281_v58 = vmul.f32 0.17677669, %v271_v50  ;;  %v614_v60 = vpack.c.bf16 %v435_v51, %v432_v49  ;;  %1224 = vmatpush3.bf16.msra.mxu0 %v612_v35 }
 0x1da   :  { %v279_v2 = vmul.f32 0.17677669, %v263_v55  ;;  %v613_v4 = vpack.c.bf16 %v427_v56, %v424_v54 }
 0x1db   :  { %v441_v5 = vpack.c.bf16 %v281_v58, %v280_v57 }
 0x1dc   :  { %v440_v6 = vpack.c.bf16 %v279_v2, %v278_v1  ;;  %v1187_v7 = vpop.f32.mrb[12].mxu1  ;;  %1225 = vmatprep.subr.bf16.mxu0 %v613_v4 }
 0x1dd   :  { %v329_v9 = vpop.f32.mrb[13].mxu1  ;;  %1226 = vmatpush3.bf16.msra.mxu0 %v613_v4  ;;  %v338_v11 = vadd.f32 %v1187_v7, %v1058_v8 }
 0x1de   :  { %v1188_v10 = vpop.f32.mrb[14].mxu1  ;;  %1227 = vmatprep.subr.bf16.mxu0 %v614_v60  ;;  %v330_v16 = vadd.f32 %v1058_v8, %v329_v9 }
 0x1df   :  { %v341_v14 = vadd.f32 %v1188_v10, %v1058_v8  ;;  %v332_v15 = vpop.f32.mrb[15].mxu1 }
 0x1e0   :  { %v333_v17 = vadd.f32 %v1058_v8, %v332_v15 }
 0x1e1   :  { %v443_v18 = vpack.c.bf16 %v341_v14, %v338_v11  ;;  %1228 = vmatpush3.bf16.msra.mxu0 %v614_v60 }
 0x1e2   :  { %v442_v19 = vpack.c.bf16 %v333_v17, %v330_v16 }
 0x1e3   :  { %v462_v31 = vsel %vm196_vm1, %v443_v18, 0 }
 0x1e4   :  { %v1191_v20 = vpop.f32.mrb[16].mxu1  ;;  %1293 = vmatprep.subr.msk.bf16.mxu1 %vm196_vm1, %v442_v19  ;;  %v459_v21 = vsel %vm196_vm1, %v442_v19, 0 }
 0x1e5   :  { %v345_v22 = vpop.f32.mrb[17].mxu1  ;;  %1206 = vmatpush3.bf16.xpose.msra.mxu1 %v459_v21  ;;  %v354_v24 = vadd.f32 %v1191_v20, %v1058_v8 }
 0x1e6   :  { %v1192_v23 = vpop.f32.mrb[18].mxu1  ;;  %1294 = vmatprep.subr.msk.bf16.mxu1 %vm196_vm1, %v443_v18  ;;  %v346_v27 = vadd.f32 %v1058_v8, %v345_v22 }
 0x1e7   :  { %v357_v25 = vadd.f32 %v1192_v23, %v1058_v8  ;;  %v348_v26 = vpop.f32.mrb[19].mxu1 }
 0x1e8   :  { %v349_v28 = vadd.f32 %v1058_v8, %v348_v26 }
 0x1e9   :  { %v445_v29 = vpack.c.bf16 %v357_v25, %v354_v24 }
 0x1ea   :  { %v444_v30 = vpack.c.bf16 %v349_v28, %v346_v27 }
 0x1eb   :  { %v468_v35 = vsel %vm196_vm1, %v445_v29, 0 }
 0x1ec   :  { %v465_v32 = vsel %vm196_vm1, %v444_v30, 0 }
 0x1ed   :  { %1208 = vmatpush3.bf16.xpose.msra.mxu1 %v462_v31 }
 0x1ee   :  { %1295 = vmatprep.subr.msk.bf16.mxu1 %vm196_vm1, %v444_v30 }
 0x1f5   :  { %1210 = vmatpush3.bf16.xpose.msra.mxu1 %v465_v32 }
 0x1f6   :  { %1296 = vmatprep.subr.msk.bf16.mxu1 %vm196_vm1, %v445_v29 }
 0x1fd   :  { %1212 = vmatpush3.bf16.xpose.msra.mxu1 %v468_v35 }
 0x204   :  { %1214 = vmatmul.mubr.msk.bf16.vlgmr.msra.gmra.mrb[20].mxu1 %vm196_vm1, %v439_v39 }
 0x205   :  { %1217 = vmatprep.mubr.msk.bf16.mxu1 %vm196_vm1, %v440_v6 }
 0x20c   :  { %1218 = vmatmul.mubr.msk.bf16.gmra.mrb[24].mxu1 %vm196_vm1, %v441_v5 }
 0x2d7   :  { %v1215_v36 = vpop.f32.mrb[20].mxu1 }
 0x2d8   :  { %v504_v37 = vpop.f32.mrb[21].mxu1  ;;  %v541_v38 = vsel %vm85_vm0, %v1215_v36, -inf }
 0x2d9   :  { %542 = vmax.xlane.f32.xlu1 %v541_v38  ;;  %v1216_v40 = vpop.f32.mrb[22].mxu1  ;;  %v535_v41 = vsel %vm85_vm0, %v504_v37, -inf }
 0x2da   :  { %536 = vmax.xlane.f32.xlu0 %v535_v41  ;;  %v507_v42 = vpop.f32.mrb[23].mxu1  ;;  %v544_v43 = vsel %vm85_vm0, %v1216_v40, -inf  ;;  %v708_v41 = vld [vmem:[%s1786_s10] sm:$0xff] }
 0x2db   :  { %v538_v33 = vsel %vm85_vm0, %v507_v42, -inf }
 0x2dd   :  { %545 = vmax.xlane.f32.xlu1 %v544_v43 }
 0x2de   :  { %539 = vmax.xlane.f32.xlu0 %v538_v33  ;;  %v710_v33 = vld [vmem:[%s1786_s10 + $0x10] sm:$0xff] }
 0x2df   :  { %v1219_v34 = vpop.f32.mrb[24].mxu1 }
 0x2e0   :  { %v520_v39 = vpop.f32.mrb[25].mxu1  ;;  %v553_v48 = vsel %vm85_vm0, %v1219_v34, -inf }
 0x2e1   :  { %v1220_v44 = vpop.f32.mrb[26].mxu1  ;;  %v547_v45 = vsel %vm85_vm0, %v520_v39, -inf }
 0x2e2   :  { %548 = vmax.xlane.f32.xlu0 %v547_v45  ;;  %v523_v46 = vpop.f32.mrb[27].mxu1  ;;  %v556_v49 = vsel %vm85_vm0, %v1220_v44, -inf  ;;  %v819_v45 = vld [vmem:[%s1787_s12 + $0x8] sm:$0xff] }
 0x2e3   :  { %v550_v47 = vsel %vm85_vm0, %v523_v46, -inf }
 0x2e4   :  { %551 = vmax.xlane.f32.xlu1 %v550_v47 }
 0x2e6   :  { %554 = vmax.xlane.f32.xlu0 %v553_v48 }
 0x2e8   :  { %557 = vmax.xlane.f32.xlu1 %v556_v49 }
 0x366   :  { %v543_v50 = vpop.xlane.xlu1 %542 }
 0x367   :  { %v561_v51 = vsub.f32 %v1215_v36, %v543_v50  ;;  %v537_v52 = vpop.xlane.xlu0 %536 }
 0x368   :  { %v559_v53 = vsub.f32 %v504_v37, %v537_v52 }
 0x369   :  { %v571_v54 = vmul.f32 1.442695, %v561_v51 }
 0x36a   :  { %v567_v55 = vmul.f32 1.442695, %v559_v53  ;;  %v546_v56 = vpop.xlane.xlu1 %545 }
 0x36b   :  { %v562_v57 = vsub.f32 %v1216_v40, %v546_v56  ;;  %v540_v58 = vpop.xlane.xlu0 %539 }
 0x36c   :  { %1297 = vpow2.f32 %v567_v55  ;;  %v560_v60 = vsub.f32 %v507_v42, %v540_v58  ;;  %v709_v42 = vld [vmem:[%s1786_s10 + $0x8] sm:$0xff] }
 0x36d   :  { %v573_v1 = vmul.f32 1.442695, %v562_v57  ;;  %1299 = vpow2.f32 %v571_v54  ;;  %v716_v43 = vpack.c.bf16 %v709_v42, %v708_v41  ;;  %v926_v42 = vld [vmem:[%s1788_s14 + $0x30] sm:$0xff] }
 0x36e   :  { %v569_v2 = vmul.f32 1.442695, %v560_v60 }
 0x36f   :  { %1301 = vpow2.f32 %v573_v1  ;;  %v549_v4 = vpop.xlane.xlu0 %548  ;;  %1237 = vmatprep.subr.bf16.mxu0 %v716_v43 }
 0x370   :  { %1303 = vpow2.f32 %v569_v2  ;;  %v563_v5 = vsub.f32 %v520_v39, %v549_v4 }
 0x371   :  { %v552_v6 = vpop.xlane.xlu1 %551 }
 0x372   :  { %v575_v7 = vmul.f32 1.442695, %v563_v5  ;;  %v564_v8 = vsub.f32 %v523_v46, %v552_v6 }
 0x373   :  { %v555_v9 = vpop.xlane.xlu0 %554 }
 0x374   :  { %1305 = vpow2.f32 %v575_v7  ;;  %v577_v10 = vmul.f32 1.442695, %v564_v8  ;;  %v565_v11 = vsub.f32 %v1219_v34, %v555_v9  ;;  %v711_v34 = vld [vmem:[%s1786_s10 + $0x18] sm:$0xff] }
 0x375   :  { %v558_v14 = vpop.xlane.xlu1 %557  ;;  %v717_v39 = vpack.c.bf16 %v711_v34, %v710_v33  ;;  %v928_v34 = vld [vmem:[%s1788_s14 + $0x40] sm:$0xff] }
 0x376   :  { %v1298_v15 = vpop.eup %1297  ;;  %1307 = vpow2.f32 %v577_v10  ;;  %v579_v16 = vmul.f32 1.442695, %v565_v11  ;;  %v566_v17 = vsub.f32 %v1220_v44, %v558_v14  ;;  %v818_v44 = vld [vmem:[%s1787_s12] sm:$0xff] }
 0x377   :  { %v583_v18 = vsel %vm85_vm0, %v1298_v15, 0.0  ;;  %v1300_v19 = vpop.eup %1299  ;;  %v826_v46 = vpack.c.bf16 %v819_v45, %v818_v44  ;;  %v930_v45 = vld [vmem:[%s1788_s14 + $0x50] sm:$0xff] }
 0x378   :  { %1309 = vpow2.f32 %v579_v16  ;;  %v581_v20 = vmul.f32 1.442695, %v566_v17  ;;  %584 = vadd.xlane.f32.xlu0 %v583_v18  ;;  %v589_v24 = vsel %vm85_vm0, %v1300_v19, 0.0 }
 0x379   :  { %v1302_v21 = vpop.eup %1301  ;;  %1249 = vmatprep.subr.bf16.mxu1 %v826_v46 }
 0x37a   :  { %v1304_v22 = vpop.eup %1303  ;;  %v608_v23 = vpack.c.bf16 %v1302_v21, %v1300_v19  ;;  %1311 = vpow2.f32 %v581_v20  ;;  %v592_v29 = vsel %vm85_vm0, %v1302_v21, 0.0  ;;  %1250 = vmatpush3.bf16.msra.mxu1 %v826_v46  ;;  %v931_v46 = vld [vmem:[%s1788_s14 + $0x58] sm:$0xff] }
 0x37b   :  { %v586_v25 = vsel %vm85_vm0, %v1304_v22, 0.0  ;;  %v607_v26 = vpack.c.bf16 %v1304_v22, %v1298_v15 }
 0x37c   :  { %590 = vadd.xlane.f32.xlu0 %v589_v24  ;;  %587 = vadd.xlane.f32.xlu1 %v586_v25 }
 0x37d   :  { %1229 = vmatprep.mubr.msk.bf16.mxu0 %vm85_vm0, %v607_v26 }
 0x37e   :  { %v1306_v27 = vpop.eup %1305  ;;  %1230 = vmatmul.mubr.msk.bf16.vlgmr.msra.gmra.mrb[12].mxu0 %vm85_vm0, %v608_v23 }
 0x37f   :  { %v595_v28 = vsel %vm85_vm0, %v1306_v27, 0.0  ;;  %1238 = vmatpush3.bf16.msra.mxu0 %v716_v43  ;;  %v927_v43 = vld [vmem:[%s1788_s14 + $0x38] sm:$0xff] }
 0x380   :  { %v1308_v30 = vpop.eup %1307  ;;  %596 = vadd.xlane.f32.xlu0 %v595_v28  ;;  %593 = vadd.xlane.f32.xlu1 %v592_v29  ;;  %v821_v28 = vld [vmem:[%s1787_s12 + $0x18] sm:$0xff]  ;;  %v943_v33 = vpack.c.bf16 %v927_v43, %v926_v42 }
 0x381   :  { %v609_v31 = vpack.c.bf16 %v1308_v30, %v1306_v27  ;;  %v598_v36 = vsel %vm85_vm0, %v1308_v30, 0.0  ;;  %1239 = vmatprep.subr.bf16.mxu0 %v717_v39  ;;  %v820_v27 = vld [vmem:[%s1787_s12 + $0x10] sm:$0xff]  ;;  %v920_v30 = vld [vmem:[%s1788_s14] sm:$0xff] }
 0x382   :  { %v1310_v32 = vpop.eup %1309  ;;  %v827_v29 = vpack.c.bf16 %v821_v28, %v820_v27 }
 0x383   :  { %1233 = vmatprep.mubr.msk.bf16.mxu0 %vm85_vm0, %v609_v31  ;;  %v601_v35 = vsel %vm85_vm0, %v1310_v32, 0.0  ;;  %1240 = vmatpush3.bf16.msra.mxu0 %v717_v39  ;;  %v921_v31 = vld [vmem:[%s1788_s14 + $0x8] sm:$0xff] }
 0x384   :  { %v1312_v37 = vpop.eup %1311  ;;  %602 = vadd.xlane.f32.xlu0 %v601_v35  ;;  %599 = vadd.xlane.f32.xlu1 %v598_v36  ;;  %v940_v35 = vpack.c.bf16 %v921_v31, %v920_v30  ;;  %v923_v36 = vld [vmem:[%s1788_s14 + $0x18] sm:$0xff]  ;;  %v929_v39 = vld [vmem:[%s1788_s14 + $0x48] sm:$0xff] }
 0x385   :  { %v610_v38 = vpack.c.bf16 %v1312_v37, %v1310_v32  ;;  %v604_v40 = vsel %vm85_vm0, %v1312_v37, 0.0  ;;  %1251 = vmatprep.subr.bf16.mxu1 %v827_v29  ;;  %v922_v32 = vld [vmem:[%s1788_s14 + $0x10] sm:$0xff]  ;;  %v944_v44 = vpack.c.bf16 %v929_v39, %v928_v34 }
 0x386   :  { %1252 = vmatpush3.bf16.msra.mxu1 %v827_v29  ;;  %v941_v37 = vpack.c.bf16 %v923_v36, %v922_v32  ;;  %1261 = vmatprep.subr.bf16.mxu0 %v940_v35 }
 0x387   :  { %1234 = vmatmul.mubr.msk.bf16.gmra.mrb[16].mxu0 %vm85_vm0, %v610_v38  ;;  %v924_v38 = vld [vmem:[%s1788_s14 + $0x20] sm:$0xff] }
 0x388   :  { %605 = vadd.xlane.f32.xlu1 %v604_v40  ;;  %v925_v40 = vld [vmem:[%s1788_s14 + $0x28] sm:$0xff] }
 0x389   :  { %v942_v41 = vpack.c.bf16 %v925_v40, %v924_v38 }
 0x405   :  { %v585_v47 = vpop.xlane.xlu0 %584 }
 0x406   :  { %1313 = vrcp.f32 %v585_v47  ;;  %v945_v47 = vpack.c.bf16 %v931_v46, %v930_v45 }
 0x409   :  { %v588_v48 = vpop.xlane.xlu1 %587  ;;  %v591_v49 = vpop.xlane.xlu0 %590 }
 0x40a   :  { %1315 = vrcp.f32 %v591_v49 }
 0x40d   :  { %v594_v50 = vpop.xlane.xlu1 %593  ;;  %v597_v51 = vpop.xlane.xlu0 %596 }
 0x40e   :  { %1317 = vrcp.f32 %v594_v50 }
 0x40f   :  { %1319 = vrcp.f32 %v588_v48 }
 0x410   :  { %1321 = vrcp.f32 %v597_v51  ;;  %v1314_v55 = vpop.eup %1313 }
 0x411   :  { %v600_v52 = vpop.xlane.xlu1 %599  ;;  %v603_v53 = vpop.xlane.xlu0 %602 }
 0x412   :  { %1323 = vrcp.f32 %v603_v53  ;;  %v1080_v53 = vld [vmem:[%s1789_s11] ss:$0 sm:$0xff] }
 0x414   :  { %v1316_v57 = vpop.eup %1315 }
 0x415   :  { %v606_v54 = vpop.xlane.xlu1 %605 }
 0x416   :  { %1325 = vrcp.f32 %v606_v54 }
 0x417   :  { %1327 = vrcp.f32 %v600_v52 }
 0x418   :  { %v1318_v60 = vpop.eup %1317 }
 0x419   :  { %v1320_v2 = vpop.eup %1319 }
 0x41a   :  { %v1322_v11 = vpop.eup %1321 }
 0x41c   :  { %v1324_v15 = vpop.eup %1323 }
 0x420   :  { %v1326_v17 = vpop.eup %1325 }
 0x421   :  { %v1328_v19 = vpop.eup %1327 }
 0x451   :  { %v1231_v56 = vpop.f32.mrb[12].mxu0 }
 0x452   :  { %v661_v58 = vpop.f32.mrb[13].mxu0  ;;  %v702_v4 = vmul.f32 %v1316_v57, %v1231_v56 }
 0x453   :  { %v1232_v1 = vpop.f32.mrb[14].mxu0  ;;  %v700_v7 = vmul.f32 %v1314_v55, %v661_v58 }
 0x454   :  { %v703_v5 = vmul.f32 %v1318_v60, %v1232_v1  ;;  %v664_v6 = vpop.f32.mrb[15].mxu0 }
 0x455   :  { %v701_v8 = vmul.f32 %v1320_v2, %v664_v6 }
 0x456   :  { %v713_v9 = vpack.c.bf16 %v703_v5, %v702_v4 }
 0x457   :  { %v712_v10 = vpack.c.bf16 %v701_v8, %v700_v7 }
 0x459   :  { %1241 = vmatprep.mubr.msk.bf16.mxu0 %vm196_vm1, %v712_v10 }
 0x45a   :  { %v1235_v14 = vpop.f32.mrb[16].mxu0  ;;  %1242 = vmatmul.mubr.msk.bf16.vlgmr.msra.gmra.mrb[20].mxu0 %vm196_vm1, %v713_v9 }
 0x45b   :  { %v677_v16 = vpop.f32.mrb[17].mxu0  ;;  %v706_v20 = vmul.f32 %v1324_v15, %v1235_v14  ;;  %1262 = vmatpush3.bf16.msra.mxu0 %v940_v35 }
 0x45c   :  { %v1236_v18 = vpop.f32.mrb[18].mxu0  ;;  %v704_v23 = vmul.f32 %v1322_v11, %v677_v16  ;;  %1263 = vmatprep.subr.bf16.mxu0 %v941_v37  ;;  %v934_v16 = vld [vmem:[%s1788_s14 + $0x70] sm:$0xff] }
 0x45d   :  { %v707_v21 = vmul.f32 %v1326_v17, %v1236_v18  ;;  %v680_v22 = vpop.f32.mrb[19].mxu0  ;;  %v935_v17 = vld [vmem:[%s1788_s14 + $0x78] sm:$0xff] }
 0x45e   :  { %v705_v24 = vmul.f32 %v1328_v19, %v680_v22  ;;  %v947_v18 = vpack.c.bf16 %v935_v17, %v934_v16  ;;  %v1081_v19 = vld [vmem:[%s1790_s13] ss:$0 sm:$0xff] }
 0x45f   :  { %v715_v25 = vpack.c.bf16 %v707_v21, %v706_v20  ;;  %1264 = vmatpush3.bf16.msra.mxu0 %v941_v37 }
 0x460   :  { %v714_v26 = vpack.c.bf16 %v705_v24, %v704_v23  ;;  %1265 = vmatprep.subr.bf16.mxu0 %v942_v41 }
 0x462   :  { %1245 = vmatprep.mubr.msk.bf16.mxu0 %vm196_vm1, %v714_v26 }
 0x463   :  { %1246 = vmatmul.mubr.msk.bf16.gmra.mrb[24].mxu0 %vm196_vm1, %v715_v25 }
 0x464   :  { %1266 = vmatpush3.bf16.msra.mxu0 %v942_v41 }
 0x465   :  { %1267 = vmatprep.subr.bf16.mxu0 %v943_v33 }
 0x468   :  { %1268 = vmatpush3.bf16.msra.mxu0 %v943_v33 }
 0x469   :  { %1269 = vmatprep.subr.bf16.mxu0 %v944_v44 }
 0x46c   :  { %1270 = vmatpush3.bf16.msra.mxu0 %v944_v44 }
 0x46d   :  { %1271 = vmatprep.subr.bf16.mxu0 %v945_v47 }
 0x470   :  { %1272 = vmatpush3.bf16.msra.mxu0 %v945_v47 }
 0x52d   :  { %v1243_v48 = vpop.f32.mrb[20].mxu0 }
 0x52e   :  { %v764_v49 = vpop.f32.mrb[21].mxu0  ;;  %v797_v52 = vadd.f32 %v1243_v48, %v1533_v3 }
 0x52f   :  { %v795_v50 = vadd.f32 %v764_v49, %v1521_v62  ;;  %v1244_v51 = vpop.f32.mrb[22].mxu0  ;;  %v1086_v49 = vld [vmem:[%s1791_s15] ss:$0 sm:$0xff] }
 0x530   :  { %v798_v54 = vadd.f32 %v1244_v51, %v1519_v61  ;;  %v767_v55 = vpop.f32.mrb[23].mxu0  ;;  %v1692_v1 = vadd.f32 %v1080_v53, %v797_v52 }
 0x531   :  { %v796_v56 = vadd.f32 %v767_v55, %v1523_v63  ;;  %v1688_v58 = vadd.f32 %v1080_v53, %v795_v50 }
 0x532   :  { %v1686_v57 = vadd.f32 %v1080_v53, %v798_v54 }
 0x533   :  { %v1690_v60 = vadd.f32 %v1080_v53, %v796_v56 }
 0x534   :  { %v823_v3 = vpack.c.bf16 %v1686_v57, %v1692_v1 }
 0x535   :  { %v822_v62 = vpack.c.bf16 %v1690_v60, %v1688_v58 }
 0x536   :  { %v1247_v2 = vpop.f32.mrb[24].mxu0 }
 0x537   :  { %v780_v4 = vpop.f32.mrb[25].mxu0  ;;  %1253 = vmatprep.mubr.msk.bf16.mxu1 %vm196_vm1, %v822_v62  ;;  %v801_v5 = vadd.f32 %v1247_v2, %v1552_v12  ;;  %v933_v12 = vld [vmem:[%s1788_s14 + $0x68] sm:$0xff] }
 0x538   :  { %v799_v61 = vadd.f32 %v780_v4, %v1517_v59  ;;  %v1248_v63 = vpop.f32.mrb[26].mxu0  ;;  %1254 = vmatmul.mubr.msk.bf16.vlgmr.msra.gmra.mrb[28].mxu1 %vm196_vm1, %v823_v3 }
 0x539   :  { %v802_v6 = vadd.f32 %v1248_v63, %v1554_v13  ;;  %v783_v7 = vpop.f32.mrb[27].mxu0  ;;  %v1710_v14 = vadd.f32 %v1080_v53, %v801_v5 }
 0x53a   :  { %v800_v8 = vadd.f32 %v783_v7, %v1525_v0  ;;  %v1706_v10 = vadd.f32 %v1080_v53, %v799_v61  ;;  %v932_v0 = vld [vmem:[%s1788_s14 + $0x60] sm:$0xff] }
 0x53b   :  { %v1704_v9 = vadd.f32 %v1080_v53, %v802_v6  ;;  %v946_v13 = vpack.c.bf16 %v933_v12, %v932_v0 }
 0x53c   :  { %v1708_v11 = vadd.f32 %v1080_v53, %v800_v8 }
 0x53d   :  { %v825_v15 = vpack.c.bf16 %v1704_v9, %v1710_v14  ;;  %1273 = vmatprep.subr.bf16.mxu0 %v946_v13 }
 0x53e   :  { %v824_v59 = vpack.c.bf16 %v1708_v11, %v1706_v10  ;;  %1274 = vmatpush3.bf16.msra.mxu0 %v946_v13 }
 0x53f   :  { %1275 = vmatprep.subr.bf16.mxu0 %v947_v18 }
 0x540   :  { %1257 = vmatprep.mubr.msk.bf16.mxu1 %vm196_vm1, %v824_v59 }
 0x541   :  { %1258 = vmatmul.mubr.msk.bf16.gmra.mrb[32].mxu1 %vm196_vm1, %v825_v15 }
 0x542   :  { %1276 = vmatpush3.bf16.msra.mxu0 %v947_v18 }
 0x60b   :  { %v1255_v20 = vpop.f32.mrb[28].mxu1 }
 0x60c   :  { %v890_v21 = vadd.f32 %v1255_v20, %v1081_v19  ;;  %v881_v22 = vpop.f32.mrb[29].mxu1 }
 0x60d   :  { %v882_v23 = vadd.f32 %v1081_v19, %v881_v22  ;;  %v1256_v24 = vpop.f32.mrb[30].mxu1 }
 0x60e   :  { %v893_v25 = vadd.f32 %v1256_v24, %v1081_v19  ;;  %v884_v26 = vpop.f32.mrb[31].mxu1  ;;  %v914_v28 = vmax.f32 %v890_v21, 0.0 }
 0x60f   :  { %v885_v27 = vadd.f32 %v1081_v19, %v884_v26  ;;  %v912_v30 = vmax.f32 %v882_v23, 0.0 }
 0x610   :  { %v915_v29 = vmax.f32 %v893_v25, 0.0 }
 0x611   :  { %v913_v31 = vmax.f32 %v885_v27, 0.0 }
 0x612   :  { %v937_v32 = vpack.c.bf16 %v915_v29, %v914_v28 }
 0x613   :  { %v936_v35 = vpack.c.bf16 %v913_v31, %v912_v30 }
 0x614   :  { %v1259_v36 = vpop.f32.mrb[32].mxu1 }
 0x615   :  { %v906_v37 = vadd.f32 %v1259_v36, %v1081_v19  ;;  %v897_v38 = vpop.f32.mrb[33].mxu1  ;;  %1277 = vmatprep.mubr.bf16.mxu0 %v936_v35 }
 0x616   :  { %v898_v40 = vadd.f32 %v1081_v19, %v897_v38  ;;  %v1260_v41 = vpop.f32.mrb[34].mxu1  ;;  %1278 = vmatmul.mubr.bf16.vlgmr.msra.gmra.mrb[28].mxu0 %v937_v32 }
 0x617   :  { %v909_v42 = vadd.f32 %v1260_v41, %v1081_v19  ;;  %v900_v43 = vpop.f32.mrb[35].mxu1  ;;  %v918_v34 = vmax.f32 %v906_v37, 0.0 }
 0x618   :  { %v901_v33 = vadd.f32 %v1081_v19, %v900_v43  ;;  %v916_v44 = vmax.f32 %v898_v40, 0.0 }
 0x619   :  { %v919_v39 = vmax.f32 %v909_v42, 0.0 }
 0x61a   :  { %v917_v45 = vmax.f32 %v901_v33, 0.0 }
 0x61b   :  { %v939_v46 = vpack.c.bf16 %v919_v39, %v918_v34 }
 0x61c   :  { %v938_v47 = vpack.c.bf16 %v917_v45, %v916_v44 }
 0x61e   :  { %1281 = vmatprep.mubr.bf16.mxu0 %v938_v47 }
 0x61f   :  { %1282 = vmatmul.mubr.bf16.gmra.mrb[32].mxu0 %v939_v46 }
 0x6e9   :  { %v1279_v48 = vpop.f32.mrb[28].mxu0 }
 0x6ea   :  { %v1015_v50 = vadd.f32 %v1279_v48, %v1692_v1  ;;  %v982_v51 = vpop.f32.mrb[29].mxu0 }
 0x6eb   :  { %v1013_v52 = vadd.f32 %v982_v51, %v1688_v58  ;;  %v1280_v53 = vpop.f32.mrb[30].mxu0 }
 0x6ec   :  { %v1030_v54 = vadd.f32 %v1086_v49, %v1015_v50  ;;  %v1016_v55 = vadd.f32 %v1280_v53, %v1686_v57  ;;  %v985_v56 = vpop.f32.mrb[31].mxu0 }
 0x6ed   :  { %v1028_v62 = vadd.f32 %v1086_v49, %v1013_v52  ;;  %v1014_v3 = vadd.f32 %v985_v56, %v1690_v60 }
 0x6ee   :  { %1038 = vst.msk [vmem:[%s1792_s16 + $0x10] sm:$0xff] %vm196_vm1, %v1030_v54  ;;  %v1031_v2 = vadd.f32 %v1086_v49, %v1016_v55 }
 0x6ef   :  { %1036 = vst.msk [vmem:[%s1792_s16] sm:$0xff] %vm196_vm1, %v1028_v62  ;;  %v1029_v58 = vadd.f32 %v1086_v49, %v1014_v3 }
 0x6f0   :  { %1039 = vst.msk [vmem:[%s1792_s16 + $0x18] sm:$0xff] %vm196_vm1, %v1031_v2 }
 0x6f1   :  { %1037 = vst.msk [vmem:[%s1792_s16 + $0x8] sm:$0xff] %vm196_vm1, %v1029_v58 }
 0x6f2   :  { %v1283_v57 = vpop.f32.mrb[32].mxu0 }
 0x6f3   :  { %v1019_v60 = vadd.f32 %v1283_v57, %v1710_v14  ;;  %v998_v1 = vpop.f32.mrb[33].mxu0 }
 0x6f4   :  { %v1017_v4 = vadd.f32 %v998_v1, %v1706_v10  ;;  %v1284_v61 = vpop.f32.mrb[34].mxu0 }
 0x6f5   :  { %v1034_v63 = vadd.f32 %v1086_v49, %v1019_v60  ;;  %v1020_v5 = vadd.f32 %v1284_v61, %v1704_v9  ;;  %v1001_v6 = vpop.f32.mrb[35].mxu0 }
 0x6f6   :  { %v1032_v7 = vadd.f32 %v1086_v49, %v1017_v4  ;;  %v1018_v8 = vadd.f32 %v1001_v6, %v1708_v11 }
 0x6f7   :  { %1042 = vst.msk [vmem:[%s1792_s16 + $0x30] sm:$0xff] %vm196_vm1, %v1034_v63  ;;  %v1035_v59 = vadd.f32 %v1086_v49, %v1020_v5 }
 0x6f8   :  { %1040 = vst.msk [vmem:[%s1792_s16 + $0x20] sm:$0xff] %vm196_vm1, %v1032_v7  ;;  %v1033_v10 = vadd.f32 %v1086_v49, %v1018_v8 }
 0x6f9   :  { %1043 = vst.msk [vmem:[%s1792_s16 + $0x38] sm:$0xff] %vm196_vm1, %v1035_v59 }
 0x6fa   :  { %1041 = vst.msk [vmem:[%s1792_s16 + $0x28] sm:$0xff] %vm196_vm1, %v1033_v10 }

// kernel: _forward_one.4
= control target key start
LH: loop header
LB: loop body
LE: loop exit
PB: predicated region body
PF: predicated region fallthrough
CT: control target
= control target key end

     0   :  { %vm103_vm0 = vcmask 261120   ;;  %vm444_vm1 = vcmask 520192   ;;  %vm437_vm2 = vcmask 523264   ;;  %vm768_vm3 = vcmask 258048   ;;  %s1496_s6 = inlined_call_operand.vmem [shape: f32[32,32], index: 6, kind: input, shape index: {}]   ;;  %s1497_s1 = inlined_call_operand.vmem [shape: f32[64,32], index: 1, kind: input, shape index: {}]   ;;  %s1498_s2 = inlined_call_operand.vmem [shape: f32[64,32], index: 2, kind: input, shape index: {}]   ;;  %s1499_s3 = inlined_call_operand.vmem [shape: f32[1,32], index: 3, kind: input, shape index: {}]   ;;  %s1500_s4 = inlined_call_operand.vmem [shape: f32[32,32], index: 4, kind: input, shape index: {}]   ;;  %s1501_s0 = inlined_call_operand.vmem [shape: f32[21,32], index: 0, kind: input, shape index: {}]   ;;  %s1502_s8 = inlined_call_operand.vmem [shape: f32[32,32], index: 8, kind: input, shape index: {}]   ;;  %s1503_s7 = inlined_call_operand.vmem [shape: f32[1,32], index: 7, kind: input, shape index: {}]   ;;  %s1504_s5 = inlined_call_operand.vmem [shape: f32[1,32], index: 5, kind: input, shape index: {}]   ;;  %s1505_s9 = inlined_call_operand.vmem [shape: f32[1,32], index: 9, kind: input, shape index: {}]   ;;  %s1506_s10 = inlined_call_operand.vmem [shape: f32[32,32], index: 10, kind: input, shape index: {}]   ;;  %s1507_s12 = inlined_call_operand.vmem [shape: f32[32,128], index: 12, kind: input, shape index: {}]   ;;  %s1508_s14 = inlined_call_operand.vmem [shape: f32[128,32], index: 14, kind: input, shape index: {}]   ;;  %s1509_s16 = inlined_call_operand.vmem [shape: f32[32,32], index: 16, kind: input, shape index: {}]   ;;  %s1510_s11 = inlined_call_operand.vmem [shape: f32[1,32], index: 11, kind: input, shape index: {}]   ;;  %s1511_s13 = inlined_call_operand.vmem [shape: f32[1,128], index: 13, kind: input, shape index: {}]   ;;  %s1512_s17 = inlined_call_operand.vmem [shape: f32[1,32], index: 17, kind: input, shape index: {}]   ;;  %s1513_s19 = inlined_call_operand.vmem [shape: f32[64,32], index: 19, kind: output, shape index: {1}]   ;;  %s1514_s15 = inlined_call_operand.vmem [shape: f32[1,32], index: 15, kind: input, shape index: {}]   ;;  %s1515_s18 = inlined_call_operand.vmem [shape: f32[21,32], index: 18, kind: output, shape index: {0}]  }
   0x1   :  { %1519 = sst [smem:[#allocation2_spill]] %s1496_s6  ;;  %v88_v38 = vld [vmem:[%s1500_s4] sm:$0xff]  ;;  %v89_v39 = vld [vmem:[%s1500_s4 + $0x8] sm:$0xff]  ;;  %v90_v40 = vld [vmem:[%s1500_s4 + $0x10] sm:$0xff] }
   0x2   :  { %1520 = sst [smem:[#allocation3_spill]] %s1497_s1  ;;  %s1523_s20 = sld [smem:[#allocation2_spill]]  ;;  %v94_v42 = vpack.c.bf16 %v89_v39, %v88_v38  ;;  %v91_v43 = vld [vmem:[%s1500_s4 + $0x18] sm:$0xff]  ;;  %v1250_v44 = vld [vmem:[%s1501_s0] sm:$0xff]  ;;  %v1255_v45 = vld [vmem:[%s1501_s0 + $0x8] sm:$0xff] }
   0x3   :  { %1521 = sst [smem:[#allocation4_spill]] %s1498_s2  ;;  %s1524_s26 = sld [smem:[#allocation3_spill]]  ;;  %v95_v47 = vpack.c.bf16 %v91_v43, %v90_v40  ;;  %v92_v48 = vpack.c.bf16 %v1255_v45, %v1250_v44  ;;  %v1264_v51 = vld [vmem:[%s1501_s0 + $0x10] sm:$0x1f]  ;;  %v271_v55 = vld [vmem:[%s1502_s8] sm:$0xff]  ;;  %v272_v56 = vld [vmem:[%s1502_s8 + $0x8] sm:$0xff] }
   0x4   :  { %1522 = sst [smem:[#allocation5_spill]] %s1499_s3  ;;  %s1526_s22 = sld [smem:[#allocation4_spill]]  ;;  %946 = vmatprep.subr.bf16.mxu0 %v94_v42  ;;  %v93_v52 = vpack.c.bf16 %v1264_v51, %v1264_v51  ;;  %v273_v57 = vld [vmem:[%s1502_s8 + $0x10] sm:$0xff]  ;;  %v279_v58 = vpack.c.bf16 %v272_v56, %v271_v55  ;;  %v274_v59 = vld [vmem:[%s1502_s8 + $0x18] sm:$0xff]  ;;  %v873_v38 = vld [vmem:[%s1505_s9] ss:$0 sm:$0xff] }
   0x5   :  { %s1525_s30 = sld [smem:[#allocation5_spill]]  ;;  %947 = vmatpush3.bf16.msra.mxu0 %v94_v42  ;;  %950 = vmatprep.mubr.msk.bf16.mxu0 %vm103_vm0, %v92_v48  ;;  %v280_v60 = vpack.c.bf16 %v274_v59, %v273_v57 }
   0x6   :  { %948 = vmatprep.subr.bf16.mxu0 %v95_v47 }
   0x8   :  { %v177_v0 = vld [vmem:[%s1523_s20] sm:$0xff]  ;;  %v178_v1 = vld [vmem:[%s1523_s20 + $0x8] sm:$0xff]  ;;  %v179_v2 = vld [vmem:[%s1523_s20 + $0x10] sm:$0xff] }
   0x9   :  { %v185_v3 = vpack.c.bf16 %v178_v1, %v177_v0  ;;  %v180_v4 = vld [vmem:[%s1523_s20 + $0x18] sm:$0xff]  ;;  %v62_v5 = vld [vmem:[%s1524_s26] sm:$0xff]  ;;  %v63_v6 = vld [vmem:[%s1524_s26 + $0x8] sm:$0xff]  ;;  %949 = vmatpush3.bf16.msra.mxu0 %v95_v47 }
   0xa   :  { %v186_v7 = vpack.c.bf16 %v180_v4, %v179_v2  ;;  %v161_v9 = vld [vmem:[%s1526_s22] sm:$0xff]  ;;  %v162_v10 = vld [vmem:[%s1526_s22 + $0x8] sm:$0xff]  ;;  %v64_v13 = vld [vmem:[%s1524_s26 + $0x10] sm:$0xff]  ;;  %966 = vmatprep.subr.bf16.mxu0 %v279_v58 }
   0xb   :  { %v864_v8 = vld [vmem:[%s1525_s30] ss:$0 sm:$0xff]  ;;  %954 = vmatprep.subr.bf16.mxu1 %v185_v3  ;;  %v65_v14 = vld [vmem:[%s1524_s26 + $0x18] sm:$0xff]  ;;  %v163_v15 = vld [vmem:[%s1526_s22 + $0x10] sm:$0xff] }
   0xc   :  { %v77_v11 = vadd.f32 %v864_v8, %v62_v5  ;;  %v78_v12 = vadd.f32 %v864_v8, %v63_v6  ;;  %955 = vmatpush3.bf16.msra.mxu1 %v185_v3  ;;  %v1202_v16 = vadd.f32 %v864_v8, %v64_v13  ;;  %v1204_v17 = vadd.f32 %v864_v8, %v65_v14  ;;  %v164_v18 = vld [vmem:[%s1526_s22 + $0x18] sm:$0xff]  ;;  %v66_v19 = vld [vmem:[%s1524_s26 + $0x20] sm:$0xff]  ;;  %v67_v20 = vld [vmem:[%s1524_s26 + $0x28] sm:$0xff] }
   0xd   :  { %956 = vmatprep.subr.bf16.mxu1 %v186_v7  ;;  %v81_v23 = vadd.f32 %v864_v8, %v66_v19  ;;  %v82_v24 = vadd.f32 %v864_v8, %v67_v20  ;;  %v165_v25 = vld [vmem:[%s1526_s22 + $0x20] sm:$0xff]  ;;  %v166_v26 = vld [vmem:[%s1526_s22 + $0x28] sm:$0xff]  ;;  %v68_v27 = vld [vmem:[%s1524_s26 + $0x30] sm:$0xff]  ;;  %951 = vmatmul.mubr.msk.bf16.vlgmr.msra.gmra.mrb[0].mxu0 %vm103_vm0, %v93_v52 }
   0xe   :  { %v169_v21 = vadd.f32 %v161_v9, %v77_v11  ;;  %v170_v22 = vadd.f32 %v162_v10, %v78_v12  ;;  %v171_v28 = vadd.f32 %v163_v15, %v1202_v16  ;;  %v172_v29 = vadd.f32 %v164_v18, %v1204_v17  ;;  %v69_v30 = vld [vmem:[%s1524_s26 + $0x38] sm:$0xff]  ;;  %v167_v32 = vld [vmem:[%s1526_s22 + $0x30] sm:$0xff]  ;;  %967 = vmatpush3.bf16.msra.mxu0 %v279_v58  ;;  %v868_v1 = vld [vmem:[%s1503_s7] ss:$0 sm:$0xff] }
   0xf   :  { %v83_v31 = vadd.f32 %v864_v8, %v68_v27  ;;  %v168_v33 = vld [vmem:[%s1526_s22 + $0x38] sm:$0xff]  ;;  %v173_v35 = vadd.f32 %v165_v25, %v81_v23  ;;  %v174_v36 = vadd.f32 %v166_v26, %v82_v24  ;;  %v84_v37 = vadd.f32 %v864_v8, %v69_v30  ;;  %968 = vmatprep.subr.bf16.mxu0 %v280_v60 }
  0x10   :  { %v181_v34 = vpack.c.bf16 %v170_v22, %v169_v21  ;;  %957 = vmatpush3.bf16.msra.mxu1 %v186_v7  ;;  %v182_v41 = vpack.c.bf16 %v172_v29, %v171_v28  ;;  %v1272_v54 = vpack.c.bf16 %v78_v12, %v77_v11  ;;  %v1290_v61 = vpack.c.bf16 %v1204_v17, %v1202_v16  ;;  %v865_v11 = vld [vmem:[%s1504_s5] ss:$0 sm:$0xff] }
  0x11   :  { %v183_v46 = vpack.c.bf16 %v174_v36, %v173_v35  ;;  %v175_v49 = vadd.f32 %v167_v32, %v83_v31  ;;  %v176_v50 = vadd.f32 %v168_v33, %v84_v37  ;;  %v1292_v62 = vpack.c.bf16 %v82_v24, %v81_v23 }
  0x12   :  { %958 = vmatprep.mubr.msk.bf16.mxu1 %vm103_vm0, %v181_v34  ;;  %970 = vmatprep.mubr.msk.bf16.mxu0 %vm103_vm0, %v1272_v54  ;;  %v1298_v63 = vpack.c.bf16 %v84_v37, %v83_v31 }
  0x13   :  { %959 = vmatmul.mubr.msk.bf16.vlgmr.msra.gmra.mrb[0].mxu1 %vm103_vm0, %v182_v41  ;;  %v184_v53 = vpack.c.bf16 %v176_v50, %v175_v49  ;;  %969 = vmatpush3.bf16.msra.mxu0 %v280_v60 }
  0x14   :  { %962 = vmatprep.mubr.msk.bf16.mxu1 %vm103_vm0, %v183_v46 }
  0x16   :  { %971 = vmatmul.mubr.msk.bf16.vlgmr.msra.gmra.mrb[4].mxu0 %vm103_vm0, %v1290_v61 }
  0x17   :  { %974 = vmatprep.mubr.msk.bf16.mxu0 %vm103_vm0, %v1292_v62 }
  0x1b   :  { %963 = vmatmul.mubr.msk.bf16.gmra.mrb[4].mxu1 %vm103_vm0, %v184_v53 }
  0x1e   :  { %975 = vmatmul.mubr.msk.bf16.gmra.mrb[8].mxu0 %vm103_vm0, %v1298_v63 }
  0xe0   :  { %v952_v12 = vpop.f32.mrb[0].mxu0 }
  0xe1   :  { %v144_v15 = vpop.f32.mrb[1].mxu0  ;;  %v153_v34 = vadd.f32 %v952_v12, %v865_v11 }
  0xe2   :  { %v145_v18 = vadd.f32 %v865_v11, %v144_v15  ;;  %v953_v19 = vpop.f32.mrb[2].mxu0 }
  0xe3   :  { %v147_v22 = vpop.f32.mrb[3].mxu0  ;;  %v160_v36 = vmul.f32 0.17677669, %v153_v34 }
  0xe4   :  { %v158_v25 = vmul.f32 0.17677669, %v145_v18  ;;  %v148_v26 = vadd.f32 %v865_v11, %v147_v22 }
  0xe5   :  { %v366_v37 = vpack.c.bf16 %v160_v36, %v160_v36 }
  0xe6   :  { %v960_v0 = vpop.f32.mrb[0].mxu1  ;;  %v159_v29 = vmul.f32 0.17677669, %v148_v26  ;;  %v532_v26 = vld [vmem:[%s1506_s10] sm:$0xff] }
  0xe7   :  { %v240_v2 = vpop.f32.mrb[1].mxu1  ;;  %v249_v4 = vadd.f32 %v960_v0, %v868_v1 }
  0xe8   :  { %v961_v3 = vpop.f32.mrb[2].mxu1  ;;  %v241_v7 = vadd.f32 %v868_v1, %v240_v2  ;;  %v365_v31 = vpack.c.bf16 %v159_v29, %v158_v25  ;;  %v534_v29 = vld [vmem:[%s1506_s10 + $0x10] sm:$0xff] }
  0xe9   :  { %v252_v5 = vadd.f32 %v961_v3, %v868_v1  ;;  %v243_v6 = vpop.f32.mrb[3].mxu1  ;;  %v972_v39 = vpop.f32.mrb[4].mxu0 }
  0xea   :  { %v244_v8 = vadd.f32 %v868_v1, %v243_v6  ;;  %986 = vmatprep.mubr.msk.bf16.mxu1 %vm103_vm0, %v365_v31  ;;  %v343_v40 = vadd.f32 %v972_v39, %v873_v38  ;;  %v334_v41 = vpop.f32.mrb[5].mxu0 }
  0xeb   :  { %v368_v9 = vpack.c.bf16 %v252_v5, %v249_v4  ;;  %v335_v42 = vadd.f32 %v873_v38, %v334_v41  ;;  %v973_v43 = vpop.f32.mrb[6].mxu0 }
  0xec   :  { %v367_v10 = vpack.c.bf16 %v244_v8, %v241_v7  ;;  %v346_v46 = vadd.f32 %v973_v43, %v873_v38  ;;  %v337_v47 = vpop.f32.mrb[7].mxu0 }
  0xed   :  { %v381_v32 = vsel %vm103_vm0, %v368_v9, 0  ;;  %v338_v48 = vadd.f32 %v873_v38, %v337_v47 }
  0xee   :  { %1050 = vmatprep.subr.msk.bf16.mxu1 %vm103_vm0, %v367_v10  ;;  %v378_v13 = vsel %vm103_vm0, %v367_v10, 0  ;;  %v964_v14 = vpop.f32.mrb[4].mxu1  ;;  %v469_v49 = vpack.c.bf16 %v346_v46, %v343_v40 }
  0xef   :  { %979 = vmatpush3.bf16.xpose.msra.mxu1 %v378_v13  ;;  %v265_v16 = vadd.f32 %v964_v14, %v868_v1  ;;  %v256_v17 = vpop.f32.mrb[5].mxu1  ;;  %v468_v50 = vpack.c.bf16 %v338_v48, %v335_v42 }
  0xf0   :  { %1051 = vmatprep.subr.msk.bf16.mxu1 %vm103_vm0, %v368_v9  ;;  %v257_v20 = vadd.f32 %v868_v1, %v256_v17  ;;  %v965_v21 = vpop.f32.mrb[6].mxu1 }
  0xf1   :  { %v268_v23 = vadd.f32 %v965_v21, %v868_v1  ;;  %v259_v24 = vpop.f32.mrb[7].mxu1  ;;  %v976_v52 = vpop.f32.mrb[8].mxu0  ;;  %990 = vmatprep.subr.bf16.mxu0 %v468_v50 }
  0xf2   :  { %v260_v27 = vadd.f32 %v868_v1, %v259_v24  ;;  %v350_v53 = vpop.f32.mrb[9].mxu0  ;;  %991 = vmatpush3.bf16.msra.mxu0 %v468_v50  ;;  %v359_v5 = vadd.f32 %v976_v52, %v873_v38  ;;  %v608_v50 = vld [vmem:[%s1507_s12 + $0x8] sm:$0xff] }
  0xf3   :  { %v370_v28 = vpack.c.bf16 %v268_v23, %v265_v16  ;;  %992 = vmatprep.subr.bf16.mxu0 %v469_v49  ;;  %v351_v1 = vadd.f32 %v873_v38, %v350_v53  ;;  %v977_v2 = vpop.f32.mrb[10].mxu0  ;;  %v609_v53 = vld [vmem:[%s1507_s12 + $0x10] sm:$0xff] }
  0xf4   :  { %v369_v30 = vpack.c.bf16 %v260_v27, %v257_v20  ;;  %v353_v3 = vpop.f32.mrb[11].mxu0  ;;  %v362_v7 = vadd.f32 %v977_v2, %v873_v38  ;;  %v533_v27 = vld [vmem:[%s1506_s10 + $0x8] sm:$0xff]  ;;  %v683_v2 = vld [vmem:[%s1508_s14 + $0x20] sm:$0xff] }
  0xf5   :  { %v387_v35 = vsel %vm103_vm0, %v370_v28, 0  ;;  %v354_v4 = vadd.f32 %v873_v38, %v353_v3  ;;  %v684_v3 = vld [vmem:[%s1508_s14 + $0x28] sm:$0xff] }
  0xf6   :  { %v384_v33 = vsel %vm103_vm0, %v369_v30, 0  ;;  %993 = vmatpush3.bf16.msra.mxu0 %v469_v49  ;;  %v471_v8 = vpack.c.bf16 %v362_v7, %v359_v5  ;;  %v607_v49 = vld [vmem:[%s1507_s12] sm:$0xff]  ;;  %v771_v5 = vld [vmem:[%s1509_s16 + $0x8] sm:$0xff]  ;;  %v699_v7 = vpack.c.bf16 %v684_v3, %v683_v2 }
  0xf7   :  { %981 = vmatpush3.bf16.xpose.msra.mxu1 %v381_v32  ;;  %v470_v6 = vpack.c.bf16 %v354_v4, %v351_v1  ;;  %v613_v52 = vpack.c.bf16 %v608_v50, %v607_v49  ;;  %v770_v4 = vld [vmem:[%s1509_s16] sm:$0xff] }
  0xf8   :  { %1052 = vmatprep.subr.msk.bf16.mxu1 %vm103_vm0, %v369_v30  ;;  %v535_v30 = vld [vmem:[%s1506_s10 + $0x18] sm:$0xff] }
  0xf9   :  { %994 = vmatprep.subr.bf16.mxu0 %v470_v6  ;;  %v539_v31 = vpack.c.bf16 %v535_v30, %v534_v29  ;;  %v691_v30 = vld [vmem:[%s1508_s14 + $0x60] sm:$0xff] }
  0xfa   :  { %995 = vmatpush3.bf16.msra.mxu0 %v470_v6  ;;  %v774_v6 = vpack.c.bf16 %v771_v5, %v770_v4 }
  0xfb   :  { %996 = vmatprep.subr.bf16.mxu0 %v471_v8 }
  0xfe   :  { %997 = vmatpush3.bf16.msra.mxu0 %v471_v8  ;;  %v685_v8 = vld [vmem:[%s1508_s14 + $0x30] sm:$0xff] }
  0xff   :  { %983 = vmatpush3.bf16.xpose.msra.mxu1 %v384_v33 }
 0x100   :  { %1053 = vmatprep.subr.msk.bf16.mxu1 %vm103_vm0, %v370_v28  ;;  %v538_v28 = vpack.c.bf16 %v533_v27, %v532_v26 }
 0x102   :  { %1002 = vmatprep.subr.bf16.mxu0 %v538_v28 }
 0x107   :  { %985 = vmatpush3.bf16.xpose.msra.mxu1 %v387_v35 }
 0x10e   :  { %987 = vmatmul.mubr.msk.bf16.vlgmr.msra.gmra.mrb[8].mxu1 %vm103_vm0, %v366_v37 }
 0x1e1   :  { %v988_v55 = vpop.f32.mrb[8].mxu1 }
 0x1e2   :  { %v423_v56 = vpop.f32.mrb[9].mxu1  ;;  %v445_v57 = vsel %vm444_vm1, %v988_v55, -inf }
 0x1e3   :  { %446 = vmax.xlane.f32.xlu1 %v445_v57  ;;  %v989_v58 = vpop.f32.mrb[10].mxu1  ;;  %v438_v59 = vsel %vm437_vm2, %v423_v56, -inf  ;;  %v679_v57 = vld [vmem:[%s1508_s14] sm:$0xff] }
 0x1e4   :  { %439 = vmax.xlane.f32.xlu0 %v438_v59  ;;  %v426_v60 = vpop.f32.mrb[11].mxu1  ;;  %v680_v58 = vld [vmem:[%s1508_s14 + $0x8] sm:$0xff]  ;;  %v681_v59 = vld [vmem:[%s1508_s14 + $0x10] sm:$0xff] }
 0x1e5   :  { %v441_v0 = vsel %vm437_vm2, %v426_v60, -inf }
 0x1e8   :  { %442 = vmax.xlane.f32.xlu0 %v441_v0  ;;  %v682_v0 = vld [vmem:[%s1508_s14 + $0x18] sm:$0xff] }
 0x1e9   :  { %v698_v1 = vpack.c.bf16 %v682_v0, %v681_v59 }
 0x270   :  { %v447_v9 = vpop.xlane.xlu1 %446 }
 0x271   :  { %v450_v10 = vsub.f32 %v988_v55, %v447_v9  ;;  %v440_v11 = vpop.xlane.xlu0 %439  ;;  %v610_v55 = vld [vmem:[%s1507_s12 + $0x18] sm:$0xff] }
 0x272   :  { %v448_v12 = vsub.f32 %v423_v56, %v440_v11  ;;  %v614_v56 = vpack.c.bf16 %v610_v55, %v609_v53  ;;  %v686_v9 = vld [vmem:[%s1508_s14 + $0x38] sm:$0xff]  ;;  %v687_v11 = vld [vmem:[%s1508_s14 + $0x40] sm:$0xff] }
 0x273   :  { %v455_v13 = vmul.f32 1.442695, %v450_v10  ;;  %v700_v10 = vpack.c.bf16 %v686_v9, %v685_v8 }
 0x274   :  { %v451_v14 = vmul.f32 1.442695, %v448_v12  ;;  %v688_v12 = vld [vmem:[%s1508_s14 + $0x48] sm:$0xff] }
 0x275   :  { %v443_v15 = vpop.xlane.xlu0 %442 }
 0x276   :  { %1054 = vpow2.f32 %v451_v14  ;;  %v449_v16 = vsub.f32 %v426_v60, %v443_v15  ;;  %v697_v60 = vpack.c.bf16 %v680_v58, %v679_v57  ;;  %v689_v14 = vld [vmem:[%s1508_s14 + $0x50] sm:$0xff]  ;;  %v690_v15 = vld [vmem:[%s1508_s14 + $0x58] sm:$0xff] }
 0x277   :  { %1056 = vpow2.f32 %v455_v13  ;;  %v701_v13 = vpack.c.bf16 %v688_v12, %v687_v11 }
 0x278   :  { %v453_v17 = vmul.f32 1.442695, %v449_v16  ;;  %1018 = vmatprep.subr.bf16.mxu1 %v697_v60  ;;  %v702_v16 = vpack.c.bf16 %v690_v15, %v689_v14 }
 0x279   :  { %1019 = vmatpush3.bf16.msra.mxu1 %v697_v60 }
 0x27a   :  { %1058 = vpow2.f32 %v453_v17  ;;  %1020 = vmatprep.subr.bf16.mxu1 %v698_v1 }
 0x27d   :  { %1021 = vmatpush3.bf16.msra.mxu1 %v698_v1 }
 0x27e   :  { %1022 = vmatprep.subr.bf16.mxu1 %v699_v7 }
 0x280   :  { %v1055_v18 = vpop.eup %1054 }
 0x281   :  { %v457_v19 = vsel %vm437_vm2, %v1055_v18, 0.0  ;;  %v1057_v20 = vpop.eup %1056  ;;  %1023 = vmatpush3.bf16.msra.mxu1 %v699_v7 }
 0x282   :  { %458 = vadd.xlane.f32.xlu1 %v457_v19  ;;  %v463_v22 = vsel %vm444_vm1, %v1057_v20, 0.0  ;;  %v467_v25 = vpack.c.bf16 %v1057_v20, %v1057_v20  ;;  %1024 = vmatprep.subr.bf16.mxu1 %v700_v10  ;;  %v884_v20 = vld [vmem:[%s1510_s11] ss:$0 sm:$0xff] }
 0x284   :  { %v1059_v21 = vpop.eup %1058 }
 0x285   :  { %v460_v23 = vsel %vm437_vm2, %v1059_v21, 0.0  ;;  %v466_v24 = vpack.c.bf16 %v1059_v21, %v1055_v18  ;;  %1025 = vmatpush3.bf16.msra.mxu1 %v700_v10 }
 0x286   :  { %464 = vadd.xlane.f32.xlu1 %v463_v22  ;;  %461 = vadd.xlane.f32.xlu0 %v460_v23 }
 0x287   :  { %998 = vmatprep.mubr.msk.bf16.mxu0 %vm437_vm2, %v466_v24  ;;  %1026 = vmatprep.subr.bf16.mxu1 %v701_v13 }
 0x288   :  { %999 = vmatmul.mubr.msk.bf16.vlgmr.msra.gmra.mrb[12].mxu0 %vm437_vm2, %v467_v25 }
 0x289   :  { %1003 = vmatpush3.bf16.msra.mxu0 %v538_v28  ;;  %1027 = vmatpush3.bf16.msra.mxu1 %v701_v13  ;;  %v773_v28 = vld [vmem:[%s1509_s16 + $0x18] sm:$0xff] }
 0x28a   :  { %1004 = vmatprep.subr.bf16.mxu0 %v539_v31  ;;  %1028 = vmatprep.subr.bf16.mxu1 %v702_v16 }
 0x28d   :  { %1005 = vmatpush3.bf16.msra.mxu0 %v539_v31  ;;  %1029 = vmatpush3.bf16.msra.mxu1 %v702_v16  ;;  %v692_v31 = vld [vmem:[%s1508_s14 + $0x68] sm:$0xff] }
 0x28e   :  { %1010 = vmatprep.subr.bf16.mxu0 %v613_v52 }
 0x30f   :  { %v459_v32 = vpop.xlane.xlu1 %458 }
 0x310   :  { %1060 = vrcp.f32 %v459_v32  ;;  %v885_v32 = vld [vmem:[%s1511_s13] ss:$0 sm:$0xff] }
 0x313   :  { %v465_v33 = vpop.xlane.xlu1 %464  ;;  %v462_v34 = vpop.xlane.xlu0 %461 }
 0x314   :  { %1062 = vrcp.f32 %v465_v33 }
 0x315   :  { %1064 = vrcp.f32 %v462_v34 }
 0x31a   :  { %v1061_v36 = vpop.eup %1060 }
 0x31e   :  { %v1063_v38 = vpop.eup %1062 }
 0x31f   :  { %v1065_v40 = vpop.eup %1064 }
 0x35b   :  { %v1000_v35 = vpop.f32.mrb[12].mxu0 }
 0x35c   :  { %v512_v37 = vpop.f32.mrb[13].mxu0  ;;  %v531_v41 = vmul.f32 %v1063_v38, %v1000_v35 }
 0x35d   :  { %v1001_v39 = vpop.f32.mrb[14].mxu0  ;;  %v529_v43 = vmul.f32 %v1061_v36, %v512_v37 }
 0x35e   :  { %v515_v42 = vpop.f32.mrb[15].mxu0  ;;  %v537_v48 = vpack.c.bf16 %v531_v41, %v531_v41 }
 0x35f   :  { %v530_v46 = vmul.f32 %v1065_v40, %v515_v42 }
 0x361   :  { %v536_v47 = vpack.c.bf16 %v530_v46, %v529_v43  ;;  %v889_v43 = vld [vmem:[%s1512_s17] ss:$0 sm:$0xff] }
 0x363   :  { %1006 = vmatprep.mubr.msk.bf16.mxu0 %vm103_vm0, %v536_v47 }
 0x364   :  { %1007 = vmatmul.mubr.msk.bf16.vlgmr.msra.gmra.mrb[16].mxu0 %vm103_vm0, %v537_v48 }
 0x365   :  { %1011 = vmatpush3.bf16.msra.mxu0 %v613_v52 }
 0x366   :  { %1012 = vmatprep.subr.bf16.mxu0 %v614_v56 }
 0x369   :  { %1013 = vmatpush3.bf16.msra.mxu0 %v614_v56 }
 0x36a   :  { %1038 = vmatprep.subr.bf16.mxu0 %v774_v6 }
 0x437   :  { %v1008_v17 = vpop.f32.mrb[16].mxu0 }
 0x438   :  { %v596_v18 = vadd.f32 %v1008_v17, %v1264_v51  ;;  %v580_v19 = vpop.f32.mrb[17].mxu0  ;;  %v772_v51 = vld [vmem:[%s1509_s16 + $0x10] sm:$0xff] }
 0x439   :  { %v594_v21 = vadd.f32 %v580_v19, %v1250_v44  ;;  %v1009_v22 = vpop.f32.mrb[18].mxu0  ;;  %v775_v29 = vpack.c.bf16 %v773_v28, %v772_v51 }
 0x43a   :  { %v583_v23 = vpop.f32.mrb[19].mxu0  ;;  %v1403_v25 = vadd.f32 %v884_v20, %v596_v18 }
 0x43b   :  { %v595_v24 = vadd.f32 %v583_v23, %v1255_v45  ;;  %v1405_v26 = vadd.f32 %v884_v20, %v594_v21 }
 0x43c   :  { %v612_v45 = vpack.c.bf16 %v1403_v25, %v1403_v25 }
 0x43d   :  { %v1407_v27 = vadd.f32 %v884_v20, %v595_v24 }
 0x43f   :  { %v611_v44 = vpack.c.bf16 %v1407_v27, %v1405_v26 }
 0x441   :  { %1014 = vmatprep.mubr.msk.bf16.mxu0 %vm103_vm0, %v611_v44 }
 0x442   :  { %1015 = vmatmul.mubr.msk.bf16.vlgmr.msra.gmra.mrb[20].mxu0 %vm103_vm0, %v612_v45 }
 0x443   :  { %1039 = vmatpush3.bf16.msra.mxu0 %v774_v6  ;;  %1042 = vmatprep.mubr.msk.bf16.mxu0 %vm103_vm0, %v1272_v54  ;;  %v703_v54 = vpack.c.bf16 %v692_v31, %v691_v30  ;;  %v888_v6 = vld [vmem:[%s1514_s15] ss:$0 sm:$0xff] }
 0x444   :  { %1040 = vmatprep.subr.bf16.mxu0 %v775_v29 }
 0x445   :  { %1030 = vmatprep.subr.bf16.mxu1 %v703_v54 }
 0x446   :  { %1031 = vmatpush3.bf16.msra.mxu1 %v703_v54 }
 0x447   :  { %1041 = vmatpush3.bf16.msra.mxu0 %v775_v29 }
 0x44a   :  { %1043 = vmatmul.mubr.msk.bf16.vlgmr.msra.gmra.mrb[24].mxu0 %vm103_vm0, %v1290_v61  ;;  %v693_v61 = vld [vmem:[%s1508_s14 + $0x70] sm:$0xff] }
 0x44b   :  { %1046 = vmatprep.mubr.msk.bf16.mxu0 %vm103_vm0, %v1292_v62  ;;  %v694_v62 = vld [vmem:[%s1508_s14 + $0x78] sm:$0xff] }
 0x452   :  { %1047 = vmatmul.mubr.msk.bf16.gmra.mrb[28].mxu0 %vm103_vm0, %v1298_v63  ;;  %v704_v63 = vpack.c.bf16 %v694_v62, %v693_v61 }
 0x454   :  { %1032 = vmatprep.subr.bf16.mxu1 %v704_v63 }
 0x455   :  { %1033 = vmatpush3.bf16.msra.mxu1 %v704_v63 }
 0x515   :  { %v1016_v33 = vpop.f32.mrb[20].mxu0 }
 0x516   :  { %v671_v34 = vadd.f32 %v1016_v33, %v885_v32  ;;  %v662_v35 = vpop.f32.mrb[21].mxu0 }
 0x517   :  { %v663_v36 = vadd.f32 %v885_v32, %v662_v35  ;;  %v1017_v37 = vpop.f32.mrb[22].mxu0 }
 0x518   :  { %v665_v38 = vpop.f32.mrb[23].mxu0  ;;  %v678_v40 = vmax.f32 %v671_v34, 0.0 }
 0x519   :  { %v666_v39 = vadd.f32 %v885_v32, %v665_v38  ;;  %v676_v41 = vmax.f32 %v663_v36, 0.0 }
 0x51a   :  { %v696_v48 = vpack.c.bf16 %v678_v40, %v678_v40 }
 0x51b   :  { %v677_v42 = vmax.f32 %v666_v39, 0.0 }
 0x51d   :  { %v695_v46 = vpack.c.bf16 %v677_v42, %v676_v41  ;;  %v1044_v47 = vpop.f32.mrb[24].mxu0 }
 0x51e   :  { %v826_v49 = vadd.f32 %v1044_v47, %v889_v43  ;;  %v817_v50 = vpop.f32.mrb[25].mxu0 }
 0x51f   :  { %1034 = vmatprep.mubr.bf16.mxu1 %v695_v46  ;;  %v818_v52 = vadd.f32 %v889_v43, %v817_v50  ;;  %v1045_v53 = vpop.f32.mrb[26].mxu0 }
 0x520   :  { %1035 = vmatmul.mubr.bf16.vlgmr.msra.gmra.mrb[12].mxu1 %v696_v48  ;;  %850 = vst.msk [vmem:[%s1513_s19 + $0x10] sm:$0xff] %vm103_vm0, %v826_v49  ;;  %v829_v55 = vadd.f32 %v1045_v53, %v889_v43  ;;  %v820_v56 = vpop.f32.mrb[27].mxu0 }
 0x521   :  { %848 = vst.msk [vmem:[%s1513_s19] sm:$0xff] %vm103_vm0, %v818_v52  ;;  %v821_v57 = vadd.f32 %v889_v43, %v820_v56 }
 0x522   :  { %851 = vst.msk [vmem:[%s1513_s19 + $0x18] sm:$0xff] %vm103_vm0, %v829_v55 }
 0x523   :  { %849 = vst.msk [vmem:[%s1513_s19 + $0x8] sm:$0xff] %vm103_vm0, %v821_v57 }
 0x525   :  { %v1048_v58 = vpop.f32.mrb[28].mxu0 }
 0x526   :  { %v842_v59 = vadd.f32 %v1048_v58, %v889_v43  ;;  %v833_v60 = vpop.f32.mrb[29].mxu0 }
 0x527   :  { %v1049_v0 = vpop.f32.mrb[30].mxu0  ;;  %v834_v2 = vadd.f32 %v889_v43, %v833_v60 }
 0x528   :  { %854 = vst.msk [vmem:[%s1513_s19 + $0x30] sm:$0xff] %vm103_vm0, %v842_v59  ;;  %v836_v1 = vpop.f32.mrb[31].mxu0  ;;  %v845_v3 = vadd.f32 %v1049_v0, %v889_v43 }
 0x529   :  { %v837_v4 = vadd.f32 %v889_v43, %v836_v1  ;;  %852 = vst.msk [vmem:[%s1513_s19 + $0x20] sm:$0xff] %vm103_vm0, %v834_v2 }
 0x52a   :  { %855 = vst.msk [vmem:[%s1513_s19 + $0x38] sm:$0xff] %vm103_vm0, %v845_v3 }
 0x52b   :  { %853 = vst.msk [vmem:[%s1513_s19 + $0x28] sm:$0xff] %vm103_vm0, %v837_v4 }
 0x5f3   :  { %v1036_v5 = vpop.f32.mrb[12].mxu1 }
 0x5f4   :  { %v755_v7 = vadd.f32 %v1036_v5, %v1403_v25  ;;  %v739_v8 = vpop.f32.mrb[13].mxu1 }
 0x5f5   :  { %v753_v9 = vadd.f32 %v739_v8, %v1405_v26  ;;  %v1037_v10 = vpop.f32.mrb[14].mxu1 }
 0x5f6   :  { %v765_v11 = vadd.f32 %v888_v6, %v755_v7  ;;  %v742_v12 = vpop.f32.mrb[15].mxu1 }
 0x5f7   :  { %v763_v13 = vadd.f32 %v888_v6, %v753_v9  ;;  %v754_v14 = vadd.f32 %v742_v12, %v1407_v27 }
 0x5f8   :  { %769 = vst.msk [vmem:[%s1515_s18 + $0x10] sm:$0x1f] %vm768_vm3, %v765_v11 }
 0x5f9   :  { %766 = vst.msk [vmem:[%s1515_s18] sm:$0xff] %vm103_vm0, %v763_v13  ;;  %v764_v15 = vadd.f32 %v888_v6, %v754_v14 }
 0x5fb   :  { %767 = vst.msk [vmem:[%s1515_s18 + $0x8] sm:$0xff] %vm103_vm0, %v764_v15 }

// kernel: _forward_one.5
= control target key start
LH: loop header
LB: loop body
LE: loop exit
PB: predicated region body
PF: predicated region fallthrough
CT: control target
= control target key end

     0   :  { %v677_v0 = vmov 0.0   ;;  %vm678_vm0 = vmmov 0   ;;  %vm69_vm1 = vcmask 261120   ;;  %vm243_vm2 = vcmask 523264   ;;  %s959_s2 = inlined_call_operand.vmem [shape: f32[32,32], index: 2, kind: input, shape index: {}]   ;;  %s960_s0 = inlined_call_operand.vmem [shape: f32[12,32], index: 0, kind: input, shape index: {}]   ;;  %s961_s4 = inlined_call_operand.vmem [shape: f32[32,32], index: 4, kind: input, shape index: {}]   ;;  %s962_s1 = inlined_call_operand.vmem [shape: f32[64,32], index: 1, kind: input, shape index: {}]   ;;  %s963_s3 = inlined_call_operand.vmem [shape: f32[1,32], index: 3, kind: input, shape index: {}]   ;;  %s964_s6 = inlined_call_operand.vmem [shape: f32[32,32], index: 6, kind: input, shape index: {}]   ;;  %s965_s8 = inlined_call_operand.vmem [shape: f32[32,32], index: 8, kind: input, shape index: {}]   ;;  %s966_s5 = inlined_call_operand.vmem [shape: f32[1,32], index: 5, kind: input, shape index: {}]   ;;  %s967_s7 = inlined_call_operand.vmem [shape: f32[1,32], index: 7, kind: input, shape index: {}]   ;;  %s968_s11 = inlined_call_operand.vmem [shape: f32[32,32], index: 11, kind: input, shape index: {}]   ;;  %s969_s10 = inlined_call_operand.vmem [shape: f32[32,128], index: 10, kind: input, shape index: {}]   ;;  %s970_s13 = inlined_call_operand.vmem [shape: f32[32,128], index: 13, kind: input, shape index: {}]   ;;  %s971_s15 = inlined_call_operand.vmem [shape: f32[12,64], index: 15, kind: output, shape index: {0}]   ;;  %s972_s9 = inlined_call_operand.vmem [shape: f32[1,32], index: 9, kind: input, shape index: {}]   ;;  %s973_s12 = inlined_call_operand.vmem [shape: f32[1,32], index: 12, kind: input, shape index: {}]   ;;  %s974_s14 = inlined_call_operand.vmem [shape: f32[1,128], index: 14, kind: input, shape index: {}]   ;;  %s975_s16 = inlined_call_operand.vmem [shape: f32[12,128], index: 16, kind: output, shape index: {1}]  }
   0x1   :  { %977 = sst [smem:[#allocation2_spill]] %s959_s2  ;;  %599 = vmatprep.subr.bf16.mxu0 %v677_v0  ;;  %603 = vmatprep.mubr.msk.bf16.mxu0 %vm678_vm0, %v677_v0  ;;  %v53_v7 = vld [vmem:[%s960_s0] sm:$0xff]  ;;  %v54_v8 = vld [vmem:[%s960_s0 + $0x8] sm:$0xf]  ;;  %v118_v13 = vld [vmem:[%s961_s4 + $0x10] sm:$0xff]  ;;  %vm245_vm3 = vcmask 519168  }
   0x2   :  { %s978_s23 = sld [smem:[#allocation2_spill]]  ;;  %607 = vmatprep.subr.bf16.mxu1 %v677_v0  ;;  %611 = vmatprep.mubr.msk.bf16.mxu1 %vm678_vm0, %v677_v0  ;;  %v789_v9 = vpack.c.bf16 %v54_v8, %v53_v7  ;;  %v116_v10 = vld [vmem:[%s961_s4] sm:$0xff]  ;;  %v117_v11 = vld [vmem:[%s961_s4 + $0x8] sm:$0xff]  ;;  %v119_v14 = vld [vmem:[%s961_s4 + $0x18] sm:$0xff] }
   0x3   :  { %v121_v12 = vpack.c.bf16 %v117_v11, %v116_v10  ;;  %v122_v15 = vpack.c.bf16 %v119_v14, %v118_v13  ;;  %v174_v16 = vld [vmem:[%s962_s1] sm:$0xff]  ;;  %v175_v17 = vld [vmem:[%s962_s1 + $0x8] sm:$0xff]  ;;  %v176_v19 = vld [vmem:[%s962_s1 + $0x10] sm:$0xff] }
   0x4   :  { %v183_v18 = vpack.c.bf16 %v175_v17, %v174_v16  ;;  %v177_v20 = vld [vmem:[%s962_s1 + $0x18] sm:$0xff]  ;;  %v178_v24 = vld [vmem:[%s962_s1 + $0x20] sm:$0xff]  ;;  %v179_v25 = vld [vmem:[%s962_s1 + $0x28] sm:$0xff] }
   0x5   :  { %608 = vmatpush3.bf16.msra.mxu1 %v121_v12  ;;  %v184_v22 = vpack.c.bf16 %v177_v20, %v176_v19  ;;  %v185_v26 = vpack.c.bf16 %v179_v25, %v178_v24  ;;  %v557_v28 = vld [vmem:[%s963_s3] ss:$0 sm:$0xff]  ;;  %v248_v36 = vld [vmem:[%s964_s6 + $0x8] sm:$0xff]  ;;  %v249_v41 = vld [vmem:[%s964_s6 + $0x10] sm:$0xff] }
   0x6   :  { %609 = vmatprep.subr.bf16.mxu1 %v677_v0  ;;  %v191_v21 = vsel %vm69_vm1, %v183_v18, 0  ;;  %v247_v35 = vld [vmem:[%s964_s6] sm:$0xff]  ;;  %v250_v42 = vld [vmem:[%s964_s6 + $0x18] sm:$0xff]  ;;  %v180_v44 = vld [vmem:[%s962_s1 + $0x30] sm:$0xff] }
   0x7   :  { %v194_v23 = vsel %vm69_vm1, %v184_v22, 0  ;;  %v197_v27 = vsel %vm69_vm1, %v185_v26, 0  ;;  %v251_v39 = vpack.c.bf16 %v248_v36, %v247_v35  ;;  %v252_v43 = vpack.c.bf16 %v250_v42, %v249_v41  ;;  %v181_v45 = vld [vmem:[%s962_s1 + $0x38] sm:$0xff]  ;;  %v303_v48 = vld [vmem:[%s965_s8] sm:$0xff]  ;;  %v304_v49 = vld [vmem:[%s965_s8 + $0x8] sm:$0xff] }
   0x8   :  { %v55_v1 = vld [vmem:[%s978_s23] sm:$0xff]  ;;  %v56_v2 = vld [vmem:[%s978_s23 + $0x8] sm:$0xff]  ;;  %v57_v3 = vld [vmem:[%s978_s23 + $0x10] sm:$0xff]  ;;  %v186_v46 = vpack.c.bf16 %v181_v45, %v180_v44  ;;  %v308_v50 = vpack.c.bf16 %v304_v49, %v303_v48 }
   0x9   :  { %v60_v4 = vpack.c.bf16 %v56_v2, %v55_v1  ;;  %v58_v5 = vld [vmem:[%s978_s23 + $0x18] sm:$0xff]  ;;  %610 = vmatpush3.bf16.msra.mxu1 %v122_v15  ;;  %v305_v51 = vld [vmem:[%s965_s8 + $0x10] sm:$0xff]  ;;  %v559_v54 = vld [vmem:[%s966_s5] ss:$0 sm:$0xff] }
   0xa   :  { %v61_v6 = vpack.c.bf16 %v58_v5, %v57_v3  ;;  %627 = vmatprep.subr.bf16.mxu1 %v677_v0  ;;  %v200_v47 = vsel %vm69_vm1, %v186_v46, 0  ;;  %v306_v52 = vld [vmem:[%s965_s8 + $0x18] sm:$0xff]  ;;  %v562_v62 = vld [vmem:[%s967_s7] ss:$0 sm:$0xff]  ;;  %v364_v7 = vld [vmem:[%s968_s11 + $0x8] sm:$0xff] }
   0xb   :  { %600 = vmatpush3.bf16.msra.mxu0 %v60_v4  ;;  %v309_v53 = vpack.c.bf16 %v306_v52, %v305_v51  ;;  %v365_v13 = vld [vmem:[%s968_s11 + $0x10] sm:$0xff]  ;;  %v366_v14 = vld [vmem:[%s968_s11 + $0x18] sm:$0xff]  ;;  %v419_v16 = vld [vmem:[%s969_s10] sm:$0xff] }
   0xc   :  { %601 = vmatprep.subr.bf16.mxu0 %v677_v0  ;;  %v368_v15 = vpack.c.bf16 %v366_v14, %v365_v13  ;;  %v420_v17 = vld [vmem:[%s969_s10 + $0x8] sm:$0xff]  ;;  %v421_v19 = vld [vmem:[%s969_s10 + $0x10] sm:$0xff]  ;;  %v429_v25 = vld [vmem:[%s970_s13 + $0x18] sm:$0xff] }
   0xd   :  { %v424_v18 = vpack.c.bf16 %v420_v17, %v419_v16  ;;  %v427_v22 = vld [vmem:[%s970_s13 + $0x8] sm:$0xff]  ;;  %v428_v24 = vld [vmem:[%s970_s13 + $0x10] sm:$0xff] }
   0xe   :  { %v432_v26 = vpack.c.bf16 %v429_v25, %v428_v24 }
   0xf   :  { %602 = vmatpush3.bf16.msra.mxu0 %v61_v6  ;;  %v363_v6 = vld [vmem:[%s968_s11] sm:$0xff] }
  0x10   :  { %615 = vmatprep.subr.bf16.mxu0 %v677_v0  ;;  %v367_v11 = vpack.c.bf16 %v364_v7, %v363_v6 }
  0x12   :  { %604 = vmatmul.mubr.msk.bf16.vlgmr.msra.gmra.mrb[0].mxu0 %vm69_vm1, %v789_v9 }
  0x13   :  { %623 = vmatprep.mubr.msk.bf16.mxu0 %vm678_vm0, %v677_v0 }
  0x18   :  { %616 = vmatpush3.bf16.xpose.msra.mxu0 %v191_v21  ;;  %v426_v21 = vld [vmem:[%s970_s13] sm:$0xff] }
  0x19   :  { %617 = vmatprep.subr.bf16.mxu0 %v677_v0 }
  0x20   :  { %618 = vmatpush3.bf16.xpose.msra.mxu0 %v194_v23  ;;  %v431_v23 = vpack.c.bf16 %v427_v22, %v426_v21 }
  0x21   :  { %619 = vmatprep.subr.bf16.mxu0 %v677_v0 }
  0x28   :  { %620 = vmatpush3.bf16.xpose.msra.mxu0 %v197_v27 }
  0x29   :  { %621 = vmatprep.subr.bf16.mxu0 %v677_v0 }
  0x30   :  { %622 = vmatpush3.bf16.xpose.msra.mxu0 %v200_v47 }
  0x31   :  { %659 = vmatprep.subr.bf16.mxu0 %v677_v0 }
  0xe5   :  { %v107_v29 = vpop.f32.mrb[0].mxu0 }
  0xe6   :  { %v108_v30 = vadd.f32 %v557_v28, %v107_v29  ;;  %v605_v31 = vpop.f32.mrb[1].mxu0 }
  0xe7   :  { %v110_v32 = vpop.f32.mrb[2].mxu0 }
  0xe8   :  { %v111_v33 = vadd.f32 %v557_v28, %v110_v32  ;;  %v606_v34 = vpop.f32.mrb[3].mxu0  ;;  %v114_v37 = vmax.f32 %v108_v30, 0.0  ;;  %v564_v30 = vld [vmem:[%s972_s9] ss:$0 sm:$0xff] }
  0xea   :  { %v115_v38 = vmax.f32 %v111_v33, 0.0 }
  0xec   :  { %v120_v40 = vpack.c.bf16 %v115_v38, %v114_v37 }
  0xee   :  { %612 = vmatmul.mubr.msk.bf16.vlgmr.msra.gmra.mrb[0].mxu1 %vm69_vm1, %v120_v40 }
  0xef   :  { %628 = vmatpush3.bf16.msra.mxu1 %v251_v39  ;;  %631 = vmatprep.mubr.msk.bf16.mxu1 %vm678_vm0, %v677_v0  ;;  %v566_v39 = vld [vmem:[%s973_s12] ss:$0 sm:$0xff] }
  0xf0   :  { %629 = vmatprep.subr.bf16.mxu1 %v677_v0 }
  0xf3   :  { %630 = vmatpush3.bf16.msra.mxu1 %v252_v43 }
  0xf4   :  { %635 = vmatprep.subr.bf16.mxu1 %v677_v0 }
  0xf6   :  { %632 = vmatmul.mubr.msk.bf16.vlgmr.msra.gmra.mrb[4].mxu1 %vm69_vm1, %v789_v9 }
  0xf7   :  { %639 = vmatprep.mubr.msk.bf16.mxu1 %vm678_vm0, %v677_v0  ;;  %636 = vmatpush3.bf16.msra.mxu1 %v308_v50 }
  0xf8   :  { %637 = vmatprep.subr.bf16.mxu1 %v677_v0 }
  0xfb   :  { %638 = vmatpush3.bf16.msra.mxu1 %v309_v53 }
  0xfc   :  { %643 = vmatprep.subr.bf16.mxu1 %v677_v0 }
 0x1c1   :  { %v167_v55 = vpop.f32.mrb[0].mxu1 }
 0x1c2   :  { %v613_v56 = vpop.f32.mrb[1].mxu1  ;;  %v168_v58 = vadd.f32 %v559_v54, %v167_v55  ;;  %v570_v55 = vld [vmem:[%s974_s14] ss:$0 sm:$0xff] }
 0x1c3   :  { %v170_v57 = vpop.f32.mrb[2].mxu1 }
 0x1c4   :  { %v171_v59 = vadd.f32 %v559_v54, %v170_v57  ;;  %v614_v60 = vpop.f32.mrb[3].mxu1 }
 0x1c6   :  { %v182_v61 = vpack.c.bf16 %v171_v59, %v168_v58 }
 0x1c8   :  { %624 = vmatmul.mubr.msk.bf16.vlgmr.msra.gmra.mrb[4].mxu0 %vm69_vm1, %v182_v61 }
 0x1c9   :  { %v294_v63 = vpop.f32.mrb[4].mxu1  ;;  %663 = vmatprep.mubr.msk.bf16.mxu0 %vm678_vm0, %v677_v0  ;;  %660 = vmatpush3.bf16.msra.mxu0 %v424_v18 }
 0x1ca   :  { %v295_v1 = vadd.f32 %v562_v62, %v294_v63  ;;  %v633_v2 = vpop.f32.mrb[5].mxu1  ;;  %661 = vmatprep.subr.bf16.mxu0 %v677_v0 }
 0x1cb   :  { %v297_v3 = vpop.f32.mrb[6].mxu1 }
 0x1cc   :  { %v298_v4 = vadd.f32 %v562_v62, %v297_v3  ;;  %v634_v5 = vpop.f32.mrb[7].mxu1  ;;  %v301_v8 = vmax.f32 %v295_v1, 0.0 }
 0x1cd   :  { %v530_v5 = vlaneseq }
 0x1ce   :  { %v302_v10 = vmax.f32 %v298_v4, 0.0 }
 0x1cf   :  { %v531_v7 = vand.u32 127, %v530_v5 }
 0x1d0   :  { %v307_v12 = vpack.c.bf16 %v302_v10, %v301_v8 }
 0x1d1   :  { %vm532_vm4 = vcmp.lt.s32.totalorder %v531_v7, 6 }
 0x1d2   :  { %640 = vmatmul.mubr.msk.bf16.vlgmr.msra.gmra.mrb[8].mxu1 %vm69_vm1, %v307_v12 }
 0x1d3   :  { %644 = vmatpush3.bf16.msra.mxu1 %v367_v11  ;;  %647 = vmatprep.mubr.msk.bf16.mxu1 %vm678_vm0, %v677_v0 }
 0x1d4   :  { %645 = vmatprep.subr.bf16.mxu1 %v677_v0 }
 0x1d7   :  { %646 = vmatpush3.bf16.msra.mxu1 %v368_v15 }
 0x1d8   :  { %651 = vmatprep.subr.bf16.mxu1 %v677_v0 }
 0x1da   :  { %648 = vmatmul.mubr.msk.bf16.vlgmr.msra.gmra.mrb[12].mxu1 %vm69_vm1, %v789_v9  ;;  %v422_v9 = vld [vmem:[%s969_s10 + $0x18] sm:$0xff] }
 0x1db   :  { %655 = vmatprep.mubr.msk.bf16.mxu1 %vm678_vm0, %v677_v0  ;;  %v425_v20 = vpack.c.bf16 %v422_v9, %v421_v19  ;;  %652 = vmatpush3.bf16.msra.mxu1 %v431_v23 }
 0x1dc   :  { %653 = vmatprep.subr.bf16.mxu1 %v677_v0 }
 0x1dd   :  { %662 = vmatpush3.bf16.msra.mxu0 %v425_v20 }
 0x1df   :  { %654 = vmatpush3.bf16.msra.mxu1 %v432_v26 }
 0x29b   :  { %v236_v27 = vpop.f32.mrb[4].mxu0 }
 0x29c   :  { %244 = vst.msk [vmem:[%s971_s15] sm:$0xff] %vm243_vm2, %v236_v27  ;;  %v625_v28 = vpop.f32.mrb[5].mxu0 }
 0x29d   :  { %v239_v29 = vpop.f32.mrb[6].mxu0 }
 0x29e   :  { %246 = vst.msk [vmem:[%s971_s15 + $0x8] sm:$0xf] %vm245_vm3, %v239_v29  ;;  %v626_v0 = vpop.f32.mrb[7].mxu0 }
 0x2a5   :  { %v354_v31 = vpop.f32.mrb[8].mxu1 }
 0x2a6   :  { %v355_v32 = vadd.f32 %v564_v30, %v354_v31  ;;  %v641_v33 = vpop.f32.mrb[9].mxu1 }
 0x2a7   :  { %v357_v34 = vpop.f32.mrb[10].mxu1 }
 0x2a8   :  { %v358_v35 = vadd.f32 %v564_v30, %v357_v34  ;;  %v642_v36 = vpop.f32.mrb[11].mxu1  ;;  %v361_v37 = vmax.f32 %v355_v32, 0.0 }
 0x2aa   :  { %v362_v38 = vmax.f32 %v358_v35, 0.0 }
 0x2ac   :  { %v423_v40 = vpack.c.bf16 %v362_v38, %v361_v37 }
 0x2ad   :  { %v410_v41 = vpop.f32.mrb[12].mxu1 }
 0x2ae   :  { %v411_v42 = vadd.f32 %v566_v39, %v410_v41  ;;  %v649_v43 = vpop.f32.mrb[13].mxu1  ;;  %664 = vmatmul.mubr.msk.bf16.vlgmr.msra.gmra.mrb[8].mxu0 %vm69_vm1, %v423_v40 }
 0x2af   :  { %v413_v44 = vpop.f32.mrb[14].mxu1 }
 0x2b0   :  { %v414_v45 = vadd.f32 %v566_v39, %v413_v44  ;;  %v650_v46 = vpop.f32.mrb[15].mxu1  ;;  %v417_v47 = vmax.f32 %v411_v42, 0.0 }
 0x2b2   :  { %v418_v48 = vmax.f32 %v414_v45, 0.0 }
 0x2b4   :  { %v430_v49 = vpack.c.bf16 %v418_v48, %v417_v47 }
 0x2b6   :  { %656 = vmatmul.mubr.msk.bf16.vlgmr.msra.gmra.mrb[16].mxu1 %vm69_vm1, %v430_v49 }
 0x381   :  { %v514_v50 = vpop.f32.mrb[8].mxu0 }
 0x382   :  { %v665_v51 = vpop.f32.mrb[9].mxu0 }
 0x383   :  { %v517_v52 = vpop.f32.mrb[10].mxu0 }
 0x384   :  { %v666_v53 = vpop.f32.mrb[11].mxu0 }
 0x389   :  { %v470_v54 = vpop.f32.mrb[16].mxu1 }
 0x38a   :  { %v515_v56 = vadd.f32 %v514_v50, %v470_v54  ;;  %v657_v57 = vpop.f32.mrb[17].mxu1 }
 0x38b   :  { %v473_v58 = vpop.f32.mrb[18].mxu1 }
 0x38c   :  { %v528_v59 = vadd.f32 %v570_v55, %v515_v56  ;;  %v518_v60 = vadd.f32 %v517_v52, %v473_v58  ;;  %v658_v61 = vpop.f32.mrb[19].mxu1 }
 0x38e   :  { %v571_v62 = vmul.f32 -1.442695, %v528_v59  ;;  %v529_v63 = vadd.f32 %v570_v55, %v518_v60 }
 0x390   :  { %669 = vpow2.f32 %v571_v62  ;;  %v572_v1 = vmul.f32 -1.442695, %v529_v63 }
 0x392   :  { %671 = vpow2.f32 %v572_v1 }
 0x39a   :  { %v670_v2 = vpop.eup %669 }
 0x39b   :  { %v539_v3 = vadd.f32 1.0, %v670_v2 }
 0x39c   :  { %v672_v4 = vpop.eup %671 }
 0x39d   :  { %673 = vrcp.f32 %v539_v3  ;;  %v540_v6 = vadd.f32 1.0, %v672_v4 }
 0x39f   :  { %675 = vrcp.f32 %v540_v6 }
 0x3a7   :  { %v674_v8 = vpop.eup %673 }
 0x3a8   :  { %v545_v10 = vsel %vm532_vm4, %v674_v8, %v528_v59 }
 0x3a9   :  { %v676_v11 = vpop.eup %675  ;;  %547 = vst [vmem:[%s975_s16] sm:$0xff] %v545_v10 }
 0x3aa   :  { %v546_v12 = vsel %vm532_vm4, %v676_v11, %v529_v63 }
 0x3ab   :  { %548 = vst [vmem:[%s975_s16 + $0x8] sm:$0xf] %v546_v12 }

// kernel: squeeze.1
= control target key start
LH: loop header
LB: loop body
LE: loop exit
PB: predicated region body
PF: predicated region fallthrough
CT: control target
= control target key end

     0   :  { %vm7_vm0 = vcmask 31744   ;;  %s30_s8 = smov 120   ;;  %s47_s0 = inlined_call_operand.vmem [shape: f32[12], index: 0, kind: input, shape index: {}]   ;;  %s48_s1 = inlined_call_operand.vmem [shape: f32[3,4], index: 1, kind: output, shape index: {}]  }
   0x1   :  { %v4_v0 = vld [vmem:[%s47_s0] sm:$0x1]  ;;  %s29_s0 = smov 124  }
   0x2   :  { %5 = vst [vmem:[#allocation1] sm:$0x1] %v4_v0 }
   0x9   :  { %v9_v1 = vld [vmem:[#allocation1] sm:$0x1]  }
   0xa   :  { %v6_v2 = vld [vmem:[#allocation1] sm:$0x1]   ;;  %10 = vrot.lane.b32.xlu0 %v9_v1, %s29_s0 }
   0xb   :  { %8 = vst.msk [vmem:[#allocation0] sm:$0x1] %vm7_vm0, %v6_v2   ;;  %v15_v3 = vld [vmem:[#allocation1] sm:$0x1]  }
   0xe   :  { %16 = vrot.lane.b32.xlu0 %v15_v3, %s30_s8 }
  0x7c   :  { %v11_v4 = vpop.permute.xlu0 %10  }
  0x7d   :  { %14 = vst.msk [vmem:[#allocation0 + $0x1] sm:$0x1] %vm7_vm0, %v11_v4  }
  0x80   :  { %v17_v5 = vpop.permute.xlu0 %16  }
  0x81   :  { %20 = vst.msk [vmem:[#allocation0 + $0x2] sm:$0x1] %vm7_vm0, %v17_v5  }
  0x88   :  { %v24_v6 = vld [vmem:[#allocation0] sm:$0xf] }
  0x89   :  { %26 = vst [vmem:[%s48_s1] sm:$0xf] %v24_v6 }

</bundles_post_ra>
